<compile_context>
chip_gen: v7x
topology: tpu7x:2x2x1
jax: 0.10.0
libtpu: 0.0.40
codegen_flags: <defaults>
</compile_context>

<pallas_src>
import math
import functools

import jax
import jax.numpy as jnp
from jax import lax
from jax.experimental import pallas as pl
from jax.experimental.pallas import tpu as pltpu

_LANES = 128       # Cout tile width (lane-dense output blocks)
_SUBLANES = 8      # f32 sublane granularity


def _round_up(v, m):
    return ((v + m - 1) // m) * m


def _pad_cin(cin):
    """Lane-friendly padded channel count (zeros flow through x AND w).

    * cin > 64  -> multiple of 128: every tap store is an unmasked, rotate-free
      128-lane store (review: lane-align the im2col tap writes).
    * cin <= 64 -> next power of two, min 16: tap offsets are regular and
      Ktot = KH*KW*Cin_pad is a multiple of 16 (bf16 sublane packing of the
      folded weight slab).  Full 128-lane alignment is not worth a >=4x HBM
      blow-up for tiny Cin.
    """
    if cin > 64:
        return _round_up(cin, _LANES)
    p = 16
    while p < cin:
        p *= 2
    return p


def _conv_kernel(*refs, KH, KW, Cin_pad, TH, Wo, stride, use_bias):
    """One (batch, h-tile, cout-tile) grid step of the direct convolution.

    Refs (batch / band grid dims squeezed by the BlockSpec):
      x_ref     : (in_h_block, Wp, Cin_pad)  one padded input band (compute dtype)
      w_ref     : (KH*KW*Cin_pad, 128)       tap-folded weight slab, this Cout tile
      b_ref     : (1, 128)                   f32 bias tile (only when use_bias)
      o_ref     : (TH, Wo, 128)              output tile
      patch_ref : (TH, Wo, KH*KW*Cin_pad)    VMEM scratch; persists across the
                                             innermost (co) grid axis
    """
    if use_bias:
        x_ref, w_ref, b_ref, o_ref, patch_ref = refs
    else:
        x_ref, w_ref, o_ref, patch_ref = refs
        b_ref = None

    # im2col-lite gather.  The Cout-tile axis (co) is innermost and marked
    # "arbitrary", so the patch built at co == 0 stays valid and is reused for
    # every remaining Cout tile of this (n, h): the gather's VPU/vst/XLU work
    # is paid once instead of n_co times.
    @pl.when(pl.program_id(2) == 0)
    def _gather():
        for kh in range(KH):
            for kw in range(KW):
                tap = kh * KW + kw
                if stride == 1:
                    win = x_ref[pl.ds(kh, TH), pl.ds(kw, Wo), :]
                else:
                    # Strided ref slice keeps the subsample on the load path
                    # (no value-level [::stride] -> no XLU shuffle).
                    # TODO(synk): stride > 1 is not exercised by the __main__
                    # tests; validate on hardware before relying on it.
                    win = x_ref[pl.ds(kh, TH, stride=stride),
                                pl.ds(kw, Wo, stride=stride), :]
                patch_ref[:, :, tap * Cin_pad:(tap + 1) * Cin_pad] = win

    # Single lane-dense MXU contraction per tile: (TH*Wo, K) x (K, 128) -> f32.
    # No batch dims; Mosaic collapses the two free dims (h, w) into one 2-D
    # matmul dispatch.
    acc = jnp.einsum("hwk,kf->hwf", patch_ref[...], w_ref[...],
                     preferred_element_type=jnp.float32)
    if use_bias:
        acc = acc + b_ref[...].astype(jnp.float32)   # (1,128) broadcasts over (TH,Wo)
    o_ref[...] = acc.astype(o_ref.dtype)


def base_conv2d(x_nchw, weight_oihw, bias=None, *, stride=1, padding=None,
                dilation=1, tile_h=None, compute_dtype=jnp.bfloat16,
                out_dtype=None):
    """Forward of BaseConv2d with groups=1, BNorm=False, ActLayer=None."""
    assert dilation == 1, "dilation > 1 not supported"
    N, Cin, H, W = x_nchw.shape
    Cout, Cin_w, KH, KW = weight_oihw.shape
    assert Cin == Cin_w, "groups != 1 not supported"
    if padding is None:
        padding = (KH - 1) // 2 * dilation
    Ho = (H - KH + 2 * padding) // stride + 1
    Wo = (W - KW + 2 * padding) // stride + 1
    out_dtype = x_nchw.dtype if out_dtype is None else out_dtype

    # ---- lane / sublane friendly padded sizes --------------------------------
    Cin_pad = _pad_cin(Cin)                 # zero channels padded in x AND w
    # TODO(synk): layers with tiny Cin (e.g. a Cin=3 stem) remain gather-bound
    # even with this padding; route them through XLA im2col + matmul instead.
    Cout_pad = _round_up(Cout, _LANES)      # lane-dense 128-wide output tiles
    n_co = Cout_pad // _LANES
    Ktot = KH * KW * Cin_pad                # multiple of 16 (bf16 weight packing)
    Wo_pad = _round_up(Wo, _SUBLANES)       # sublane-aligned output rows

    # tile_h: target ~512 matmul rows per MXU dispatch (>=512-row tiles reach
    # ~85% of the HBM roofline); capped by Ho.  TH*Wo_pad is a multiple of 8.
    if tile_h is None:
        tile_h = max(1, min(Ho, max(1, 512 // Wo_pad)))
    TH = max(1, min(tile_h, Ho))
    n_h = -(-Ho // TH)
    Ho_pad = n_h * TH                       # ragged H handled via zero rows

    in_h_block = (TH - 1) * stride + KH     # input rows per output tile (halo incl.)
    band_stride = TH * stride

    # Input extents actually read (incl. ragged-H tile and Wo padding).
    H_need = (Ho_pad - 1) * stride + KH
    W_need = (Wo_pad - 1) * stride + KW

    # ---- glue: NCHW -> NHWC, pad, H-banding (plain JAX, single gather pass) --
    # The transpose, zero padding (spatial + Cin) and the H-band gather fuse
    # into one XLA materialization; halo duplication per band is only
    # (KH - stride)/band_stride of the input.
    # TODO(synk): keep activations NHWC end-to-end across layers to drop this
    # layout pass entirely.
    x_nhwc = jnp.transpose(x_nchw, (0, 2, 3, 1)).astype(compute_dtype)
    x_pad = jnp.pad(
        x_nhwc,
        ((0, 0),
         (padding, max(0, H_need - H - padding)),
         (padding, max(0, W_need - W - padding)),
         (0, Cin_pad - Cin)))
    Wp = x_pad.shape[2]
    row_idx = (jnp.arange(n_h)[:, None] * band_stride
               + jnp.arange(in_h_block)[None, :])          # (n_h, in_h_block)
    # (N, n_h, in_h_block, Wp, Cin_pad): only one band is ever VMEM resident
    # (double-buffered), instead of the whole padded image -> fits v7x's 64 MiB
    # and v5e's small scoped VMEM at realistic feature-map sizes.
    x_bands = x_pad[:, row_idx]

    # Tap-folded, Cin/Cout-padded weights: (Cout,Cin,KH,KW) -> (Ktot, Cout_pad)
    w = jnp.transpose(weight_oihw, (2, 3, 1, 0))           # (KH, KW, Cin, Cout)
    w = jnp.pad(w, ((0, 0), (0, 0), (0, Cin_pad - Cin), (0, Cout_pad - Cout)))
    w_folded = w.reshape(Ktot, Cout_pad).astype(compute_dtype)

    use_bias = bias is not None
    inputs = [x_bands, w_folded]
    in_specs = [
        # One input band per (n, h); block index constant across the inner co
        # axis, so the band is DMA'd once per (n, h) and revisited for free.
        pl.BlockSpec((None, None, in_h_block, Wp, Cin_pad),
                     lambda n, h, co: (n, h, 0, 0, 0)),
        # 128-wide weight slab per Cout tile (per-co re-DMA is tiny and hidden
        # by double buffering).
        pl.BlockSpec((Ktot, _LANES), lambda n, h, co: (0, co)),
    ]
    if use_bias:
        b2d = jnp.pad(bias.astype(jnp.float32).reshape(1, Cout),
                      ((0, 0), (0, Cout_pad - Cout)))
        inputs.append(b2d)
        in_specs.append(pl.BlockSpec((1, _LANES), lambda n, h, co: (0, co)))

    kernel = functools.partial(
        _conv_kernel, KH=KH, KW=KW, Cin_pad=Cin_pad, TH=TH, Wo=Wo_pad,
        stride=stride, use_bias=use_bias)

    # ---- explicit VMEM budget (v5e/v6e/v7x review items) ----------------------
    def _buf_bytes(shape, itemsize):
        s = list(shape)
        s[-1] = _round_up(s[-1], _LANES)
        if len(s) >= 2:
            s[-2] = _round_up(s[-2], _SUBLANES)
        n = 1
        for d in s:
            n *= d
        return n * itemsize

    esz = jnp.dtype(compute_dtype).itemsize
    osz = jnp.dtype(out_dtype).itemsize
    vmem_need = (2 * _buf_bytes((in_h_block, Wp, Cin_pad), esz)       # band  x2
                 + 2 * _buf_bytes((Ktot, _LANES), esz)                # weight x2
                 + 2 * _buf_bytes((TH, Wo_pad, _LANES), osz)          # out    x2
                 + (2 * _buf_bytes((1, _LANES), 4) if use_bias else 0)
                 + _buf_bytes((TH, Wo_pad, Ktot), esz))               # patch  x1
    vmem_limit = int(min(100 << 20, max(32 << 20, 2 * vmem_need + (4 << 20))))

    out = pl.pallas_call(
        kernel,
        out_shape=jax.ShapeDtypeStruct((N, Ho_pad, Wo_pad, Cout_pad), out_dtype),
        grid_spec=pltpu.PrefetchScalarGridSpec(
            num_scalar_prefetch=0,
            # co innermost so the gathered patch is reused across Cout tiles.
            grid=(N, n_h, n_co),
            in_specs=in_specs,
            out_specs=pl.BlockSpec((None, TH, Wo_pad, _LANES),
                                   lambda n, h, co: (n, h, 0, co)),
            scratch_shapes=[pltpu.VMEM((TH, Wo_pad, Ktot), compute_dtype)],
        ),
        compiler_params=pltpu.CompilerParams(
            # N / h feed both TensorCores (megacore); co must stay sequential
            # per core because it reuses the patch scratch built at co == 0.
            dimension_semantics=("parallel", "parallel", "arbitrary"),
            vmem_limit_bytes=vmem_limit),
    )(*inputs)

    # Strip H / W / Cout padding, back to NCHW (PyTorch semantics).
    out = out[:, :Ho, :Wo, :Cout]
    return jnp.transpose(out, (0, 3, 1, 2))


def init_params(key, in_channels, out_channels, kernel_size):
    """Deterministic kaiming_uniform_(a=sqrt(5)) + uniform bias, as in initWeight."""
    kw_key, b_key = jax.random.split(key)
    fan_in = in_channels * kernel_size * kernel_size
    bound = 1.0 / math.sqrt(fan_in)
    weight = jax.random.uniform(
        kw_key, (out_channels, in_channels, kernel_size, kernel_size),
        dtype=jnp.float32, minval=-bound, maxval=bound)
    bias = jax.random.uniform(
        b_key, (out_channels,), dtype=jnp.float32, minval=-bound, maxval=bound)
    return weight, bias


def _conv_ref(x, w, b, *, stride, padding):
    """Reference: XLA conv with the same bf16-operand / f32-accumulate recipe."""
    out = lax.conv_general_dilated(
        x.astype(jnp.bfloat16), w.astype(jnp.bfloat16),
        window_strides=(stride, stride),
        padding=((padding, padding), (padding, padding)),
        dimension_numbers=("NCHW", "OIHW", "NCHW"),
        preferred_element_type=jnp.float32)
    if b is not None:
        out = out + b.reshape(1, -1, 1, 1)
    return out


if __name__ == "__main__":
    key = jax.random.PRNGKey(0)
    xk, pk1, pk2, pk3, xk2 = jax.random.split(key, 5)

    N, Cin, H, W = 2, 4, 16, 16
    x = jax.random.normal(xk, (N, Cin, H, W), dtype=jnp.float32)

    # --- test 1: BaseConv2d(4, 8, 3) -> padding=1, stride=1, bias=True;
    #     tile_h=8 exercises multiple H bands (halo rows duplicated per band).
    Cout1, K1 = 8, 3
    w1, b1 = init_params(pk1, Cin, Cout1, K1)
    out1 = jax.block_until_ready(base_conv2d(x, w1, b1, stride=1, tile_h=8))
    ref1 = _conv_ref(x, w1, b1, stride=1, padding=1)
    assert out1.shape == (N, Cout1, H, W)
    assert jnp.allclose(out1, ref1, atol=1e-3, rtol=1e-3)

    # --- test 2: BaseConv2d(4, 160, 1) -> Cout tiling (n_co=2, gather built at
    #     co==0 and reused at co==1) + ragged H (tile_h=6 -> Ho_pad=18).
    Cout2, K2 = 160, 1
    w2, b2 = init_params(pk2, Cin, Cout2, K2)
    out2 = jax.block_until_ready(base_conv2d(x, w2, b2, stride=1, tile_h=6))
    ref2 = _conv_ref(x, w2, b2, stride=1, padding=0)
    assert out2.shape == (N, Cout2, H, W)
    assert jnp.allclose(out2, ref2, atol=1e-3, rtol=1e-3)

    # --- test 3: bias=False path (no bias DMA).
    out3 = jax.block_until_ready(base_conv2d(x, w1, None, stride=1, tile_h=8))
    ref3 = _conv_ref(x, w1, None, stride=1, padding=1)
    assert jnp.allclose(out3, ref3, atol=1e-3, rtol=1e-3)

    # --- test 4: explicit padding=0 -> Wo=14 (not a sublane multiple),
    #     exercises the Wo -> Wo_pad alignment path and the default tile_h.
    out4 = jax.block_until_ready(base_conv2d(x, w1, b1, stride=1, padding=0))
    ref4 = _conv_ref(x, w1, b1, stride=1, padding=0)
    assert out4.shape == (N, Cout1, 14, 14)
    assert jnp.allclose(out4, ref4, atol=1e-3, rtol=1e-3)

    # --- test 5: BaseConv2d(32, 64, 3) -> larger Cin (Cin_pad=32, Ktot=288),
    #     default tile_h heuristic, single Cout tile.
    Cin5, Cout5, K5 = 32, 64, 3
    x5 = jax.random.normal(xk2, (N, Cin5, H, W), dtype=jnp.float32)
    w5, b5 = init_params(pk3, Cin5, Cout5, K5)
    out5 = jax.block_until_ready(base_conv2d(x5, w5, b5, stride=1))
    ref5 = _conv_ref(x5, w5, b5, stride=1, padding=1)
    assert out5.shape == (N, Cout5, H, W)
    assert jnp.allclose(out5, ref5, atol=1e-3, rtol=1e-3)

    print("KERNEL_OK")
</pallas_src>

<mosaic_0001>
module attributes {stable_mosaic.version = 11 : i64} {
  func.func @_conv_kernel(%arg0: i32, %arg1: i32, %arg2: i32, %arg3: memref<1x1x10x18x16xbf16, #tpu.memory_space<vmem>>, %arg4: memref<144x128xbf16, #tpu.memory_space<vmem>>, %arg5: memref<1x128xf32, #tpu.memory_space<vmem>>, %arg6: memref<1x8x16x128xf32, #tpu.memory_space<vmem>>, %arg7: memref<8x16x144xbf16, #tpu.memory_space<vmem>>) attributes {dimension_semantics = [#tpu.dimension_semantics<parallel>, #tpu.dimension_semantics<parallel>, #tpu.dimension_semantics<arbitrary>], iteration_bounds = array<i64: 2, 2, 1>, scalar_prefetch = 0 : i64, scratch_operands = 1 : i64, tpu.core_type = #tpu.core_type<tc>, window_params = [{transform_indices = @transform_0, window_bounds = array<i64: 1, 1, 10, 18, 16>}, {transform_indices = @transform_1, window_bounds = array<i64: 144, 128>}, {transform_indices = @transform_2, window_bounds = array<i64: 1, 128>}, {transform_indices = @transform_3, window_bounds = array<i64: 1, 8, 16, 128>}]} {
    %c0_i32 = arith.constant 0 : i32
    %0 = arith.cmpi eq, %arg2, %c0_i32 : i32
    %1 = arith.extui %0 : i1 to i32
    %c0_i32_0 = arith.constant 0 : i32
    %2 = arith.cmpi ne, %1, %c0_i32_0 : i32
    scf.if %2 {
      %c0_11 = arith.constant 0 : index
      %c0_12 = arith.constant 0 : index
      %c0_13 = arith.constant 0 : index
      %c0_14 = arith.constant 0 : index
      %c0_15 = arith.constant 0 : index
      %13 = vector.load %arg3[%c0_11, %c0_12, %c0_13, %c0_14, %c0_15] : memref<1x1x10x18x16xbf16, #tpu.memory_space<vmem>>, vector<1x1x8x16x16xbf16>
      %14 = vector.shape_cast %13 : vector<1x1x8x16x16xbf16> to vector<8x16x16xbf16>
      %c0_16 = arith.constant 0 : index
      %c0_17 = arith.constant 0 : index
      %c0_18 = arith.constant 0 : index
      %15 = vector.load %arg7[%c0_16, %c0_17, %c0_18] : memref<8x16x144xbf16, #tpu.memory_space<vmem>>, vector<8x16x16xbf16>
      tpu.vector_store %arg7[%c0_16, %c0_17, %c0_18], %14 {strides = array<i32>} : memref<8x16x144xbf16, #tpu.memory_space<vmem>>, vector<8x16x16xbf16>,
      %c0_19 = arith.constant 0 : index
      %c0_20 = arith.constant 0 : index
      %c0_21 = arith.constant 0 : index
      %c1 = arith.constant 1 : index
      %c0_22 = arith.constant 0 : index
      %16 = vector.load %arg3[%c0_19, %c0_20, %c0_21, %c1, %c0_22] : memref<1x1x10x18x16xbf16, #tpu.memory_space<vmem>>, vector<1x1x8x16x16xbf16>
      %17 = vector.shape_cast %16 : vector<1x1x8x16x16xbf16> to vector<8x16x16xbf16>
      %c0_23 = arith.constant 0 : index
      %c0_24 = arith.constant 0 : index
      %c16 = arith.constant 16 : index
      %18 = vector.load %arg7[%c0_23, %c0_24, %c16] : memref<8x16x144xbf16, #tpu.memory_space<vmem>>, vector<8x16x16xbf16>
      tpu.vector_store %arg7[%c0_23, %c0_24, %c16], %17 {strides = array<i32>} : memref<8x16x144xbf16, #tpu.memory_space<vmem>>, vector<8x16x16xbf16>,
      %c0_25 = arith.constant 0 : index
      %c0_26 = arith.constant 0 : index
      %c0_27 = arith.constant 0 : index
      %c2 = arith.constant 2 : index
      %c0_28 = arith.constant 0 : index
      %19 = vector.load %arg3[%c0_25, %c0_26, %c0_27, %c2, %c0_28] : memref<1x1x10x18x16xbf16, #tpu.memory_space<vmem>>, vector<1x1x8x16x16xbf16>
      %20 = vector.shape_cast %19 : vector<1x1x8x16x16xbf16> to vector<8x16x16xbf16>
      %c0_29 = arith.constant 0 : index
      %c0_30 = arith.constant 0 : index
      %c32 = arith.constant 32 : index
      %21 = vector.load %arg7[%c0_29, %c0_30, %c32] : memref<8x16x144xbf16, #tpu.memory_space<vmem>>, vector<8x16x16xbf16>
      tpu.vector_store %arg7[%c0_29, %c0_30, %c32], %20 {strides = array<i32>} : memref<8x16x144xbf16, #tpu.memory_space<vmem>>, vector<8x16x16xbf16>,
      %c0_31 = arith.constant 0 : index
      %c0_32 = arith.constant 0 : index
      %c1_33 = arith.constant 1 : index
      %c0_34 = arith.constant 0 : index
      %c0_35 = arith.constant 0 : index
      %22 = vector.load %arg3[%c0_31, %c0_32, %c1_33, %c0_34, %c0_35] : memref<1x1x10x18x16xbf16, #tpu.memory_space<vmem>>, vector<1x1x8x16x16xbf16>
      %23 = vector.shape_cast %22 : vector<1x1x8x16x16xbf16> to vector<8x16x16xbf16>
      %c0_36 = arith.constant 0 : index
      %c0_37 = arith.constant 0 : index
      %c48 = arith.constant 48 : index
      %24 = vector.load %arg7[%c0_36, %c0_37, %c48] : memref<8x16x144xbf16, #tpu.memory_space<vmem>>, vector<8x16x16xbf16>
      tpu.vector_store %arg7[%c0_36, %c0_37, %c48], %23 {strides = array<i32>} : memref<8x16x144xbf16, #tpu.memory_space<vmem>>, vector<8x16x16xbf16>,
      %c0_38 = arith.constant 0 : index
      %c0_39 = arith.constant 0 : index
      %c1_40 = arith.constant 1 : index
      %c1_41 = arith.constant 1 : index
      %c0_42 = arith.constant 0 : index
      %25 = vector.load %arg3[%c0_38, %c0_39, %c1_40, %c1_41, %c0_42] : memref<1x1x10x18x16xbf16, #tpu.memory_space<vmem>>, vector<1x1x8x16x16xbf16>
      %26 = vector.shape_cast %25 : vector<1x1x8x16x16xbf16> to vector<8x16x16xbf16>
      %c0_43 = arith.constant 0 : index
      %c0_44 = arith.constant 0 : index
      %c64 = arith.constant 64 : index
      %27 = vector.load %arg7[%c0_43, %c0_44, %c64] : memref<8x16x144xbf16, #tpu.memory_space<vmem>>, vector<8x16x16xbf16>
      tpu.vector_store %arg7[%c0_43, %c0_44, %c64], %26 {strides = array<i32>} : memref<8x16x144xbf16, #tpu.memory_space<vmem>>, vector<8x16x16xbf16>,
      %c0_45 = arith.constant 0 : index
      %c0_46 = arith.constant 0 : index
      %c1_47 = arith.constant 1 : index
      %c2_48 = arith.constant 2 : index
      %c0_49 = arith.constant 0 : index
      %28 = vector.load %arg3[%c0_45, %c0_46, %c1_47, %c2_48, %c0_49] : memref<1x1x10x18x16xbf16, #tpu.memory_space<vmem>>, vector<1x1x8x16x16xbf16>
      %29 = vector.shape_cast %28 : vector<1x1x8x16x16xbf16> to vector<8x16x16xbf16>
      %c0_50 = arith.constant 0 : index
      %c0_51 = arith.constant 0 : index
      %c80 = arith.constant 80 : index
      %30 = vector.load %arg7[%c0_50, %c0_51, %c80] : memref<8x16x144xbf16, #tpu.memory_space<vmem>>, vector<8x16x16xbf16>
      tpu.vector_store %arg7[%c0_50, %c0_51, %c80], %29 {strides = array<i32>} : memref<8x16x144xbf16, #tpu.memory_space<vmem>>, vector<8x16x16xbf16>,
      %c0_52 = arith.constant 0 : index
      %c0_53 = arith.constant 0 : index
      %c2_54 = arith.constant 2 : index
      %c0_55 = arith.constant 0 : index
      %c0_56 = arith.constant 0 : index
      %31 = vector.load %arg3[%c0_52, %c0_53, %c2_54, %c0_55, %c0_56] : memref<1x1x10x18x16xbf16, #tpu.memory_space<vmem>>, vector<1x1x8x16x16xbf16>
      %32 = vector.shape_cast %31 : vector<1x1x8x16x16xbf16> to vector<8x16x16xbf16>
      %c0_57 = arith.constant 0 : index
      %c0_58 = arith.constant 0 : index
      %c96 = arith.constant 96 : index
      %33 = vector.load %arg7[%c0_57, %c0_58, %c96] : memref<8x16x144xbf16, #tpu.memory_space<vmem>>, vector<8x16x16xbf16>
      tpu.vector_store %arg7[%c0_57, %c0_58, %c96], %32 {strides = array<i32>} : memref<8x16x144xbf16, #tpu.memory_space<vmem>>, vector<8x16x16xbf16>,
      %c0_59 = arith.constant 0 : index
      %c0_60 = arith.constant 0 : index
      %c2_61 = arith.constant 2 : index
      %c1_62 = arith.constant 1 : index
      %c0_63 = arith.constant 0 : index
      %34 = vector.load %arg3[%c0_59, %c0_60, %c2_61, %c1_62, %c0_63] : memref<1x1x10x18x16xbf16, #tpu.memory_space<vmem>>, vector<1x1x8x16x16xbf16>
      %35 = vector.shape_cast %34 : vector<1x1x8x16x16xbf16> to vector<8x16x16xbf16>
      %c0_64 = arith.constant 0 : index
      %c0_65 = arith.constant 0 : index
      %c112 = arith.constant 112 : index
      %36 = vector.load %arg7[%c0_64, %c0_65, %c112] : memref<8x16x144xbf16, #tpu.memory_space<vmem>>, vector<8x16x16xbf16>
      tpu.vector_store %arg7[%c0_64, %c0_65, %c112], %35 {strides = array<i32>} : memref<8x16x144xbf16, #tpu.memory_space<vmem>>, vector<8x16x16xbf16>,
      %c0_66 = arith.constant 0 : index
      %c0_67 = arith.constant 0 : index
      %c2_68 = arith.constant 2 : index
      %c2_69 = arith.constant 2 : index
      %c0_70 = arith.constant 0 : index
      %37 = vector.load %arg3[%c0_66, %c0_67, %c2_68, %c2_69, %c0_70] : memref<1x1x10x18x16xbf16, #tpu.memory_space<vmem>>, vector<1x1x8x16x16xbf16>
      %38 = vector.shape_cast %37 : vector<1x1x8x16x16xbf16> to vector<8x16x16xbf16>
      %c0_71 = arith.constant 0 : index
      %c0_72 = arith.constant 0 : index
      %c128 = arith.constant 128 : index
      %39 = vector.load %arg7[%c0_71, %c0_72, %c128] : memref<8x16x144xbf16, #tpu.memory_space<vmem>>, vector<8x16x16xbf16>
      tpu.vector_store %arg7[%c0_71, %c0_72, %c128], %38 {strides = array<i32>} : memref<8x16x144xbf16, #tpu.memory_space<vmem>>, vector<8x16x16xbf16>,
    } else {
    }
    %c0 = arith.constant 0 : index
    %c0_1 = arith.constant 0 : index
    %c0_2 = arith.constant 0 : index
    %3 = vector.load %arg7[%c0, %c0_1, %c0_2] : memref<8x16x144xbf16, #tpu.memory_space<vmem>>, vector<8x16x144xbf16>
    %c0_3 = arith.constant 0 : index
    %c0_4 = arith.constant 0 : index
    %4 = vector.load %arg4[%c0_3, %c0_4] : memref<144x128xbf16, #tpu.memory_space<vmem>>, vector<144x128xbf16>
    "tpu.trace_start"() <{level = 10 : i32, message = "hwk,kf->hwf"}> : () -> ()
    %cst = arith.constant dense<0.000000e+00> : vector<8x16x128xf32>
    %5 = tpu.matmul %3, %4, %cst {dimension_numbers = #tpu.dot_dimension_numbers<[2], [0], [0, 1], [1], [0, 0, 0, 1, 1, 1], [], []>} : vector<8x16x144xbf16>, vector<144x128xbf16>, vector<8x16x128xf32> -> vector<8x16x128xf32>
    "tpu.trace_stop"() : () -> ()
    %c0_5 = arith.constant 0 : index
    %c0_6 = arith.constant 0 : index
    %6 = vector.load %arg5[%c0_5, %c0_6] : memref<1x128xf32, #tpu.memory_space<vmem>>, vector<1x128xf32>
    %7 = vector.shape_cast %6 : vector<1x128xf32> to vector<1x1x128xf32>
    %8 = vector.broadcast %7 : vector<1x1x128xf32> to vector<8x16x128xf32>
    %9 = arith.addf %5, %8 : vector<8x16x128xf32>
    %c0_7 = arith.constant 0 : index
    %c0_8 = arith.constant 0 : index
    %c0_9 = arith.constant 0 : index
    %c0_10 = arith.constant 0 : index
    %10 = vector.load %arg6[%c0_7, %c0_8, %c0_9, %c0_10] : memref<1x8x16x128xf32, #tpu.memory_space<vmem>>, vector<1x8x16x128xf32>
    %11 = vector.shape_cast %10 : vector<1x8x16x128xf32> to vector<8x16x128xf32>
    %12 = vector.shape_cast %9 : vector<8x16x128xf32> to vector<1x8x16x128xf32>
    tpu.vector_store %arg6[%c0_7, %c0_8, %c0_9, %c0_10], %12 {strides = array<i32>} : memref<1x8x16x128xf32, #tpu.memory_space<vmem>>, vector<1x8x16x128xf32>,
    return
  }
  func.func @transform_0(%arg0: i32, %arg1: i32, %arg2: i32) -> (i32, i32, i32, i32, i32) {
    %c0_i32 = arith.constant 0 : i32
    %c0_i32_0 = arith.constant 0 : i32
    %c0_i32_1 = arith.constant 0 : i32
    %c0_i32_2 = arith.constant 0 : i32
    return %arg0, %arg1, %c0_i32, %c0_i32_0, %c0_i32_1 : i32, i32, i32, i32, i32
  }
  func.func @transform_1(%arg0: i32, %arg1: i32, %arg2: i32) -> (i32, i32) {
    %c0_i32 = arith.constant 0 : i32
    %c0_i32_0 = arith.constant 0 : i32
    return %c0_i32, %arg2 : i32, i32
  }
  func.func @transform_2(%arg0: i32, %arg1: i32, %arg2: i32) -> (i32, i32) {
    %c0_i32 = arith.constant 0 : i32
    %c0_i32_0 = arith.constant 0 : i32
    return %c0_i32, %arg2 : i32, i32
  }
  func.func @transform_3(%arg0: i32, %arg1: i32, %arg2: i32) -> (i32, i32, i32, i32) {
    %c0_i32 = arith.constant 0 : i32
    %c0_i32_0 = arith.constant 0 : i32
    return %arg0, %arg1, %c0_i32, %arg2 : i32, i32, i32, i32
  }
}

</mosaic_0001>

<bundles_post_ra>
// kernel: tpu_custom_call.1
= control target key start
LH: loop header
LB: loop body
LE: loop exit
PB: predicated region body
PF: predicated region fallthrough
CT: control target
= control target key end

     0   :  { %8 = vsyncpa [#allocation4], 0  ;;  %s3118_s0 = inlined_call_operand.vmem [shape: bf16[2,2,10,18,16], index: 0, kind: input, shape index: {}]   ;;  %s3119_s1 = inlined_call_operand.vmem [shape: bf16[144,128], index: 1, kind: input, shape index: {}]   ;;  %s3120_s2 = inlined_call_operand.vmem [shape: f32[1,128], index: 2, kind: input, shape index: {}]   ;;  %s3121_s3 = inlined_call_operand.hbm [shape: f32[2,16,16,128], index: 3, kind: output, shape index: {}]  }
   0x1   :  { %10 = vsyncpa [#allocation4 + $0x1], 0  ;;  %s2574_s12 = smov 0   ;;  %s2576_s13 = smov 0  }
   0x2   :  { %s2578_s14 = smov 0   ;;  %s2580_s15 = smov 0  }
   0x3   :  { %s2582_s16 = smov 0   ;;  %s2584_s17 = smov 0  }
   0x4   :  { %s2586_s18 = smov 0   ;;  %s2588_s19 = smov 0  }
   0x5 LB: > { %s1934_s20 = sadd.s32 4294967295, %s2541_s19   ;;  %s1935_s21 = sadd.s32 4294967294, %s2541_s19   ;;  %s2541_s19 = sphi %s2588_s19, %s16_s19   ;;  %s2537_s18 = sphi %s2586_s18, %s3130_s18   ;;  %s2533_s17 = sphi %s2584_s17, %s3129_s17   ;;  %s2529_s16 = sphi %s2582_s16, %s3128_s16   ;;  %s2525_s15 = sphi %s2580_s15, %s3127_s15   ;;  %s2521_s14 = sphi %s2578_s14, %s3126_s14   ;;  %s2517_s13 = sphi %s2576_s13, %s3125_s13   ;;  %s2513_s12 = sphi %s2574_s12, %s3124_s12  }
   0x6   : > { %s31_s22 = sadd.s32 1, %s2533_s17  ;;  %s35_s23 = sadd.s32 1, %s2537_s18 }
   0x7   : > { %p33_p0 = scmp.ge.s32.totalorder %s31_s22, 2  ;;  %p136_p1 = scmp.ne.s32.totalorder %s2521_s14, %s2517_s13 }
   0x8   : > { %p137_p2 = scmp.eq.s32.totalorder %s1934_s20, 3  ;;  %p142_p5 = scmp.ne.s32.totalorder %s2517_s13, %s2513_s12 }
   0x9   : > { %s3132_s22 = smov (%p33_p0, %s31_s22), 0  ;;  %s3134_s23 = smov (!%p33_p0, %s35_s23), %s2537_s18 }
   0xa   : > { %s120_s24 = ssub.s32 %s2533_s17, %s3132_s22  ;;  %p2625_p3 = por %p137_p2, %p136_p1 }
   0xb   : > { %p37_p4 = scmp.ge.s32.totalorder %s3134_s23, 2  ;;  %p143_p6 = scmp.eq.s32.totalorder %s1935_s21, 3 }
   0xc   : > { %p1940_p7 = scmp.ge.s32.totalorder %s2541_s19, 1  ;;  %p186_p9 = scmp.lt.s32.totalorder %s2541_s19, 5 }
   0xd   : > { %s3136_s23 = smov (%p37_p4, %s3134_s23), 0  ;;  %p2634_p8 = por %p143_p6, %p142_p5 }
   0xe   : > { %s119_s27 = ssub.s32 %s2537_s18, %s3136_s23  ;;  %s126_s28 = sadd.s32 1, %s2521_s14 }
   0xf   : > { %s121_s29 = sor.u32 %s120_s24, %s119_s27  ;;  %p187_p10 = pnand %p1940_p7, %p186_p9 }
  0x10   : > { %p124_p11 = scmp.eq.s32.totalorder %s121_s29, 0  ;;  %p221_p12 = scmp.lt.s32.totalorder (!%p187_p10), %s2529_s16, 1  ;;  %v2414_v0 = vld [vmem:[%s3119_s1] sm:$0xff] (!%p187_p10)   ;;  %v2543_v1 = vmov (!%p187_p10), 0   ;;  %v2415_v2 = vld [vmem:[%s3119_s1 + $0x8] sm:$0xff] (!%p187_p10)   ;;  %vm622_vm0 = vcmask (!%p187_p10), 1046528  }
  0x11   : > { %190 = sbr.rel (%p187_p10) target bundleno = 497 (0x1f1), region = 32  ;;  %p223_p13 = scmp.lt.s32.totalorder (!%p187_p10), %s2525_s15, 1  ;;  %1687 = vmatprep.subr.bf16.mxu0 (!%p187_p10), %v2543_v1  ;;  %2217 = vmatprep.subr.bf16.mxu1 (!%p187_p10), %v2543_v1  ;;  %v2416_v3 = vld [vmem:[%s3119_s1 + $0x10] sm:$0xff] (!%p187_p10)   ;;  %vm404_vm1 = vsmask.f32 (!%p187_p10), 7424  ;;  %vm307_vm2 = vcmask (!%p187_p10), 130048  }
  0x12   : > { %s2643_s30 = scalar_select %p124_p11, %s2521_s14, %s126_s28  }
  0x13   : > { %1688 = vmatpush1.bf16.msra.mxu0 (!%p187_p10), %v2414_v0  ;;  %2226 = vmatpush1.bf16.msra.mxu1 (!%p187_p10), %v2414_v0  ;;  %s2544_s5 = smov (!%p187_p10), 48   ;;  %s2547_s8 = smov (!%p187_p10), 16   ;;  %vm525_vm3 = vcmask (!%p187_p10), 261248   ;;  %vm671_vm4 = vcmask (!%p187_p10), 392448   ;;  %vm761_vm5 = vcmask (!%p187_p10), 523648   ;;  %vm978_vm6 = vcmask (!%p187_p10), 654848  }
  0x14   : > { %1689 = vmatprep.subr.bf16.mxu0 (!%p187_p10), %v2543_v1  ;;  %2218 = vmatprep.subr.bf16.mxu1 (!%p187_p10), %v2543_v1  ;;  %s2548_s9 = smov (!%p187_p10), 64   ;;  %vm1123_vm7 = vcmask (!%p187_p10), 786048   ;;  %vm1213_vm8 = vcmask (!%p187_p10), 917248   ;;  %vm1430_vm9 = vcmask (!%p187_p10), 1048448   ;;  %s2212_s28 = sshll.u32 (!%p187_p10), %s2529_s16, 5 }
  0x17   : > { %1690 = vmatpush1.bf16.msra.mxu0 (!%p187_p10), %v2415_v2  ;;  %2227 = vmatpush1.bf16.msra.mxu1 (!%p187_p10), %v2415_v2 }
  0x18   : > { %s222_s6 = scalar_select %p221_p12, %s2529_s16, 1  ;;  %1691 = vmatprep.subr.bf16.mxu0 %v2543_v1  ;;  %2219 = vmatprep.subr.bf16.mxu1 %v2543_v1 }
  0x19   : > { %s224_s7 = scalar_select %p223_p13, %s2525_s15, 1 }
  0x1a   : > { %s2236_s10 = smul.u32 60, %s222_s6  ;;  %s2545_s6 = smov 80  }
  0x1b   : > { %s2235_s11 = smul.u32 30, %s224_s7  ;;  %1692 = vmatpush1.bf16.msra.mxu0 %v2416_v3  ;;  %2228 = vmatpush1.bf16.msra.mxu1 %v2416_v3  ;;  %s2546_s7 = smov 32  }
  0x1c   : > { %1693 = vmatprep.subr.bf16.mxu0 %v2543_v1  ;;  %2220 = vmatprep.subr.bf16.mxu1 %v2543_v1 }
  0x1d   : > { %s227_s20 = sadd.s32 %s2236_s10, %s2235_s11  ;;  %s2549_s10 = smov 96  }
  0x1e   : > { %s1942_s27 = sshll.u32 %s227_s20, 2  ;;  %s2550_s11 = smov 112  }
  0x1f   : > { %s2667_s4 = scalar_lea.vmem %s3118_s0, %s1942_s27  ;;  %s2216_s27 = sshll.u32 %s2525_s15, 4 }
  0x20   : > { %v2318_v4 = vld [vmem:[%s2667_s4 + $0x3c] sm:$0xff]   ;;  %v2319_v5 = vld [vmem:[%s2667_s4 + $0xc] sm:$0xff]   ;;  %v2321_v7 = vld [vmem:[%s2667_s4 + $0x14] ss:$0 sps:$4 sm:$0x11]   ;;  %s1815_s29 = sadd.s32 %s2216_s27, %s2212_s28 }
  0x21   : > { %745 = vrot.lane.b32.xlu1 %v2318_v4, %s2544_s5  ;;  %737 = vrot.lane.b32.xlu0 %v2319_v5, %s2544_s5  ;;  %v2320_v6 = vld [vmem:[%s2667_s4 + $0xc] sm:$0xfe]   ;;  %v2326_v8 = vld [vmem:[%s2667_s4] sm:$0xff]   ;;  %v1076_v10 = vrot.slane %v2321_v7, 1 }
  0x22   : > { %v1075_v9 = vrot.slane %v2320_v6, 1  ;;  %v2322_v11 = vld [vmem:[%s2667_s4] sm:$0xfe]   ;;  %v2323_v12 = vld [vmem:[%s2667_s4 + $0x8] ss:$0 sps:$4 sm:$0x11]  }
  0x23   : > { %v406_v13 = vshrl.u32 %v2326_v8, 16  ;;  %v623_v15 = vrot.slane %v2322_v11, 1  ;;  %v2324_v16 = vld [vmem:[%s2667_s4 + $0x30] sm:$0xfe]   ;;  %v408_v17 = vshll.u32 %v2326_v8, 16  ;;  %v624_v18 = vrot.slane %v2323_v12, 1 }
  0x24   : > { %v1077_v14 = vsel %vm622_vm0, %v1075_v9, %v1076_v10  ;;  %v2325_v19 = vld [vmem:[%s2667_s4 + $0x38] ss:$0 sps:$4 sm:$0x11]   ;;  %v635_v20 = vrot.slane %v2324_v16, 1  ;;  %v2328_v25 = vld [vmem:[%s2667_s4 + $0x3c] sm:$0xfe]  }
  0x25   : > { %1099 = vrot.lane.b32.xlu0 %v1077_v14, %s2545_s6  ;;  %v410_v21 = vrot.slane %v408_v17, 1  ;;  %v625_v22 = vsel %vm622_vm0, %v623_v15, %v624_v18  ;;  %v636_v23 = vrot.slane %v2325_v19, 1  ;;  %v2327_v24 = vld [vmem:[%s2667_s4 + $0x8] ss:$0 sps:$4 sm:$0x11]   ;;  %v1087_v30 = vrot.slane %v2328_v25, 1 }
  0x26   : > { %647 = vrot.lane.b32.xlu1 %v625_v22, %s2546_s7  ;;  %v413_v28 = vshll.u32 %v2327_v24, 16  ;;  %v2329_v29 = vld [vmem:[%s2667_s4 + $0x44] ss:$0 sps:$4 sm:$0x11]   ;;  %v2330_v31 = vld [vmem:[%s2667_s4 + $0x30] sm:$0xff]   ;;  %v2332_v35 = vld [vmem:[%s2667_s4 + $0x3c] sm:$0xff]  }
  0x27   : > { %v637_v26 = vsel %vm622_vm0, %v635_v20, %v636_v23  ;;  %v411_v27 = vor.u32 %v410_v21, %v406_v13  ;;  %v1088_v33 = vrot.slane %v2329_v29, 1  ;;  %v2331_v34 = vld [vmem:[%s2667_s4 + $0x38] ss:$0 sps:$4 sm:$0x11]   ;;  %v454_v36 = vshrl.u32 %v2330_v31, 16  ;;  %v2334_v45 = vld [vmem:[%s2667_s4 + $0xc] sm:$0xff]  }
  0x28   : > { %v415_v32 = vrot.slane %v413_v28, 1  ;;  %v456_v37 = vshll.u32 %v2330_v31, 16  ;;  %v461_v40 = vshll.u32 %v2331_v34, 16  ;;  %v2333_v41 = vld [vmem:[%s2667_s4 + $0x44] ss:$0 sps:$4 sm:$0x11]  }
  0x29   : > { %v1089_v39 = vsel %vm622_vm0, %v1087_v30, %v1088_v33  ;;  %v907_v43 = vshrl.u32 %v2332_v35, 16  ;;  %v909_v44 = vshll.u32 %v2332_v35, 16  ;;  %v914_v47 = vshll.u32 %v2333_v41, 16  ;;  %v2335_v50 = vld [vmem:[%s2667_s4 + $0x14] ss:$0 sps:$4 sm:$0x11]  }
  0x2a   : > { %655 = vrot.lane.b32.xlu1 %v637_v26, %s2546_s7  ;;  %v416_v38 = vsel %vm404_vm1, %v411_v27, %v415_v32  ;;  %v458_v42 = vrot.slane %v456_v37, 1  ;;  %v463_v46 = vrot.slane %v461_v40, 1  ;;  %v859_v51 = vshrl.u32 %v2334_v45, 16  ;;  %v2336_v58 = vld [vmem:[%s2667_s4 + $0x48] sm:$0xff]   ;;  %v2337_v63 = vld [vmem:[%s2667_s4 + $0x18] sm:$0xff]  }
  0x2b   : > { %501 = vrot.lane.b32.xlu0 %v416_v38, %s2547_s8  ;;  %v911_v49 = vrot.slane %v909_v44, 1  ;;  %v861_v52 = vshll.u32 %v2334_v45, 16  ;;  %v916_v53 = vrot.slane %v914_v47, 1  ;;  %v866_v57 = vshll.u32 %v2335_v50, 16  ;;  %v2338_v62 = vld [vmem:[%s2667_s4 + $0x48] sm:$0xff]   ;;  %v2340_v2 = vld [vmem:[%s2667_s4 + $0x18] sm:$0xff]  }
  0x2c   : > { %v459_v48 = vor.u32 %v458_v42, %v454_v36  ;;  %v2339_v0 = vld [vmem:[%s2667_s4 + $0x50] ss:$0 sps:$4 sm:$0x11]   ;;  %v1359_v4 = vshrl.u32 %v2338_v62, 16  ;;  %v1361_v5 = vshll.u32 %v2338_v62, 16  ;;  %v1311_v8 = vshrl.u32 %v2340_v2, 16 }
  0x2d   : > { %v912_v55 = vor.u32 %v911_v49, %v907_v43  ;;  %v863_v56 = vrot.slane %v861_v52, 1  ;;  %v868_v61 = vrot.slane %v866_v57, 1  ;;  %v1366_v6 = vshll.u32 %v2339_v0, 16  ;;  %v2341_v7 = vld [vmem:[%s2667_s4 + $0x20] ss:$0 sps:$4 sm:$0x11]  }
  0x2e   : > { %1107 = vrot.lane.b32.xlu1 %v1089_v39, %s2545_s6  ;;  %v464_v54 = vsel %vm404_vm1, %v459_v48, %v463_v46  ;;  %v1313_v9 = vshll.u32 %v2340_v2, 16  ;;  %v1363_v10 = vrot.slane %v1361_v5, 1  ;;  %v2342_v11 = vld [vmem:[%s2667_s4 + $0x3c] sm:$0xff]   ;;  %v1318_v14 = vshll.u32 %v2341_v7, 16  ;;  %v2344_v22 = vld [vmem:[%s2667_s4 + $0xc] sm:$0xff]   ;;  %v2362_v2 = vld [vmem:[%s2667_s4 + $0x54] sm:$0xff]  }
  0x2f   : > { %509 = vrot.lane.b32.xlu0 %v464_v54, %s2547_s8  ;;  %v917_v59 = vsel %vm404_vm1, %v912_v55, %v916_v53  ;;  %v864_v60 = vor.u32 %v863_v56, %v859_v51  ;;  %v1368_v12 = vrot.slane %v1366_v6, 1  ;;  %v2343_v15 = vld [vmem:[%s2667_s4 + $0x44] ss:$0 sps:$4 sm:$0x11]   ;;  %v466_v17 = vshrl.u32 %v2342_v11, 16  ;;  %v2352_v33 = vld [vmem:[%s2667_s4 + $0x48] sm:$0xff]  }
  0x30   : > { %v1315_v13 = vrot.slane %v1313_v9, 1  ;;  %v1364_v16 = vor.u32 %v1363_v10, %v1359_v4  ;;  %v468_v18 = vshll.u32 %v2342_v11, 16  ;;  %v1320_v20 = vrot.slane %v1318_v14, 1  ;;  %v2345_v25 = vld [vmem:[%s2667_s4 + $0x14] ss:$0 sps:$4 sm:$0x11]  }
  0x31   : > { %v869_v3 = vsel %vm404_vm1, %v864_v60, %v868_v61  ;;  %v473_v21 = vshll.u32 %v2343_v15, 16  ;;  %v418_v28 = vshrl.u32 %v2344_v22, 16  ;;  %v420_v29 = vshll.u32 %v2344_v22, 16  ;;  %v2346_v32 = vld [vmem:[%s2667_s4 + $0x3c] sm:$0xfe]   ;;  %v2350_v47 = vld [vmem:[%s2667_s4 + $0x48] sm:$0xff]  }
  0x32   : > { %962 = vrot.lane.b32.xlu1 %v917_v59, %s2548_s9  ;;  %v1316_v19 = vor.u32 %v1315_v13, %v1311_v8  ;;  %v1369_v23 = vsel %vm404_vm1, %v1364_v16, %v1368_v12  ;;  %v470_v24 = vrot.slane %v468_v18, 1  ;;  %v425_v31 = vshll.u32 %v2345_v25, 16  ;;  %v2347_v35 = vld [vmem:[%s2667_s4 + $0x44] ss:$0 sps:$4 sm:$0x11]   ;;  %v2354_v52 = vld [vmem:[%s2667_s4 + $0x18] sm:$0xff]  }
  0x33   : > { %954 = vrot.lane.b32.xlu0 %v869_v3, %s2548_s9  ;;  %v475_v27 = vrot.slane %v473_v21, 1  ;;  %v422_v34 = vrot.slane %v420_v29, 1  ;;  %v638_v38 = vrot.slane %v2346_v32, 1  ;;  %v639_v40 = vrot.slane %v2347_v35, 1  ;;  %v2348_v41 = vld [vmem:[%s2667_s4 + $0xc] sm:$0xfe]  }
  0x34   : > { %v1321_v26 = vsel %vm404_vm1, %v1316_v19, %v1320_v20  ;;  %v471_v30 = vor.u32 %v470_v24, %v466_v17  ;;  %v427_v37 = vrot.slane %v425_v31, 1  ;;  %v2349_v42 = vld [vmem:[%s2667_s4 + $0x14] ss:$0 sps:$4 sm:$0x11]   ;;  %v626_v45 = vrot.slane %v2348_v41, 1  ;;  %v2351_v53 = vld [vmem:[%s2667_s4 + $0x18] sm:$0xff]  }
  0x35   : > { %v423_v39 = vor.u32 %v422_v34, %v418_v28  ;;  %v640_v44 = vsel %vm622_vm0, %v638_v38, %v639_v40  ;;  %v627_v46 = vrot.slane %v2349_v42, 1  ;;  %v919_v48 = vshrl.u32 %v2352_v33, 16  ;;  %v2353_v51 = vld [vmem:[%s2667_s4 + $0x50] ss:$0 sps:$4 sm:$0x11]   ;;  %v2360_v14 = vld [vmem:[%s2667_s4 + $0x54] sm:$0xff]  }
  0x36   : > { %1197 = vrot.lane.b32.xlu1 %v2336_v58, %s2549_s10  ;;  %v476_v36 = vsel %vm404_vm1, %v471_v30, %v475_v27  ;;  %v921_v49 = vshll.u32 %v2352_v33, 16  ;;  %v926_v55 = vshll.u32 %v2353_v51, 16  ;;  %v2355_v56 = vld [vmem:[%s2667_s4 + $0x20] ss:$0 sps:$4 sm:$0x11]   ;;  %v871_v57 = vshrl.u32 %v2354_v52, 16 }
  0x37   : > { %1189 = vrot.lane.b32.xlu0 %v2337_v63, %s2549_s10  ;;  %v428_v43 = vsel %vm404_vm1, %v423_v39, %v427_v37  ;;  %v628_v50 = vsel %vm622_vm0, %v626_v45, %v627_v46  ;;  %v873_v58 = vshll.u32 %v2354_v52, 16  ;;  %v878_v62 = vshll.u32 %v2355_v56, 16  ;;  %v2356_v63 = vld [vmem:[%s2667_s4 + $0x48] sm:$0xfe]   ;;  %v2358_v8 = vld [vmem:[%s2667_s4 + $0x18] sm:$0xfe]  }
  0x38   : > { %v923_v54 = vrot.slane %v921_v49, 1  ;;  %v928_v60 = vrot.slane %v926_v55, 1  ;;  %v2357_v0 = vld [vmem:[%s2667_s4 + $0x50] ss:$0 sps:$4 sm:$0x11]   ;;  %v1090_v6 = vrot.slane %v2356_v63, 1 }
  0x39   : > { %v875_v61 = vrot.slane %v873_v58, 1  ;;  %v880_v5 = vrot.slane %v878_v62, 1  ;;  %v1091_v7 = vrot.slane %v2357_v0, 1  ;;  %v2359_v9 = vld [vmem:[%s2667_s4 + $0x20] ss:$0 sps:$4 sm:$0x11]  }
  0x3a   : > { %1414 = vrot.lane.b32.xlu1 %v1369_v23, %s2550_s11  ;;  %v924_v59 = vor.u32 %v923_v54, %v919_v48  ;;  %v1078_v12 = vrot.slane %v2358_v8, 1  ;;  %v1079_v13 = vrot.slane %v2359_v9, 1  ;;  %v1371_v15 = vshrl.u32 %v2362_v2, 16  ;;  %v2363_v17 = vld [vmem:[%s2667_s4 + $0x5c] ss:$0 sps:$4 sm:$0x11]  }
  0x3b   : > { %1406 = vrot.lane.b32.xlu0 %v1321_v26, %s2550_s11  ;;  %v876_v4 = vor.u32 %v875_v61, %v871_v57  ;;  %v1092_v11 = vsel %vm622_vm0, %v1090_v6, %v1091_v7  ;;  %v1373_v16 = vshll.u32 %v2362_v2, 16  ;;  %v2364_v18 = vld [vmem:[%s2667_s4 + $0x24] sm:$0xff]   ;;  %v1378_v23 = vshll.u32 %v2363_v17, 16  ;;  %v2365_v24 = vld [vmem:[%s2667_s4 + $0x2c] ss:$0 sps:$4 sm:$0x11]  }
  0x3c   : > { %v929_v3 = vsel %vm404_vm1, %v924_v59, %v928_v60  ;;  %v1080_v19 = vsel %vm622_vm0, %v1078_v12, %v1079_v13  ;;  %v2366_v21 = vld [vmem:[%s2667_s4 + $0x48] sm:$0xff]   ;;  %v1323_v25 = vshrl.u32 %v2364_v18, 16  ;;  %v1325_v26 = vshll.u32 %v2364_v18, 16  ;;  %v2367_v31 = vld [vmem:[%s2667_s4 + $0x50] ss:$0 sps:$4 sm:$0x11]  }
  0x3d   : > { %v881_v10 = vsel %vm404_vm1, %v876_v4, %v880_v5  ;;  %v1375_v20 = vrot.slane %v1373_v16, 1  ;;  %v2361_v22 = vld [vmem:[%s2667_s4 + $0x24] sm:$0xff]   ;;  %v1380_v28 = vrot.slane %v1378_v23, 1  ;;  %v1330_v30 = vshll.u32 %v2365_v24, 16  ;;  %v2368_v38 = vld [vmem:[%s2667_s4 + $0x18] sm:$0xff]  }
  0x3e   : > { %511 = vrot.lane.b32.xlu1 %v476_v36, %s2547_s8  ;;  %v1327_v29 = vrot.slane %v1325_v26, 1  ;;  %v478_v32 = vshrl.u32 %v2366_v21, 16  ;;  %v480_v33 = vshll.u32 %v2366_v21, 16  ;;  %v485_v37 = vshll.u32 %v2367_v31, 16  ;;  %v2376_v48 = vld [vmem:[%s2667_s4 + $0x54] sm:$0xff]   ;;  %v2378_v2 = vld [vmem:[%s2667_s4 + $0x24] sm:$0xff]  }
  0x3f   : > { %503 = vrot.lane.b32.xlu0 %v428_v43, %s2547_s8  ;;  %v1376_v27 = vor.u32 %v1375_v20, %v1371_v15  ;;  %v1332_v36 = vrot.slane %v1330_v30, 1  ;;  %v2369_v40 = vld [vmem:[%s2667_s4 + $0x20] ss:$0 sps:$4 sm:$0x11]   ;;  %v430_v42 = vshrl.u32 %v2368_v38, 16  ;;  %v432_v43 = vshll.u32 %v2368_v38, 16 }
  0x40   : > { %v1328_v35 = vor.u32 %v1327_v29, %v1323_v25  ;;  %v482_v39 = vrot.slane %v480_v33, 1  ;;  %v487_v41 = vrot.slane %v485_v37, 1  ;;  %v437_v46 = vshll.u32 %v2369_v40, 16  ;;  %v2372_v56 = vld [vmem:[%s2667_s4 + $0x18] sm:$0xfe]   ;;  %v2386_v17 = vld [vmem:[%s2667_s4 + $0x60] sm:$0xff]  }
  0x41   : > { %v1381_v34 = vsel %vm404_vm1, %v1376_v27, %v1380_v28  ;;  %v434_v49 = vrot.slane %v432_v43, 1  ;;  %v2373_v57 = vld [vmem:[%s2667_s4 + $0x20] ss:$0 sps:$4 sm:$0x11]   ;;  %v629_v60 = vrot.slane %v2372_v56, 1  ;;  %v931_v62 = vshrl.u32 %v2376_v48, 16 }
  0x42   : > { %657 = vrot.lane.b32.xlu1 %v640_v44, %s2546_s7  ;;  %v1333_v44 = vsel %vm404_vm1, %v1328_v35, %v1332_v36  ;;  %v483_v45 = vor.u32 %v482_v39, %v478_v32  ;;  %v439_v52 = vrot.slane %v437_v46, 1  ;;  %v630_v61 = vrot.slane %v2373_v57, 1  ;;  %v2377_v0 = vld [vmem:[%s2667_s4 + $0x5c] ss:$0 sps:$4 sm:$0x11]   ;;  %v2374_v4 = vld [vmem:[%s2667_s4 + $0x54] sm:$0xff]  }
  0x43   : > { %649 = vrot.lane.b32.xlu0 %v628_v50, %s2546_s7  ;;  %v2371_v50 = vld [vmem:[%s2667_s4 + $0x50] ss:$0 sps:$4 sm:$0x11]   ;;  %v435_v54 = vor.u32 %v434_v49, %v430_v42  ;;  %v933_v63 = vshll.u32 %v2376_v48, 16  ;;  %v938_v6 = vshll.u32 %v2377_v0, 16  ;;  %v883_v8 = vshrl.u32 %v2378_v2, 16 }
  0x44   : > { %v488_v51 = vsel %vm404_vm1, %v483_v45, %v487_v41  ;;  %v642_v55 = vrot.slane %v2371_v50, 1  ;;  %v2379_v7 = vld [vmem:[%s2667_s4 + $0x2c] ss:$0 sps:$4 sm:$0x11]   ;;  %v885_v9 = vshll.u32 %v2378_v2, 16  ;;  %v1383_v29 = vshrl.u32 %v2386_v17, 16 }
  0x45   : > { %v440_v58 = vsel %vm404_vm1, %v435_v54, %v439_v52  ;;  %v935_v5 = vrot.slane %v933_v63, 1  ;;  %v940_v12 = vrot.slane %v938_v6, 1  ;;  %v2380_v15 = vld [vmem:[%s2667_s4 + $0x54] sm:$0xfe]   ;;  %v2382_v23 = vld [vmem:[%s2667_s4 + $0x24] sm:$0xfe]  }
  0x46   : > { %747 = vrot.lane.b32.xlu1 %v2350_v47, %s2544_s5  ;;  %v2370_v47 = vld [vmem:[%s2667_s4 + $0x48] sm:$0xfe]   ;;  %v887_v13 = vrot.slane %v885_v9, 1  ;;  %v2381_v16 = vld [vmem:[%s2667_s4 + $0x5c] ss:$0 sps:$4 sm:$0x11]  }
  0x47   : > { %739 = vrot.lane.b32.xlu0 %v2351_v53, %s2544_s5  ;;  %v641_v53 = vrot.slane %v2370_v47, 1  ;;  %v1093_v21 = vrot.slane %v2380_v15, 1  ;;  %v2383_v24 = vld [vmem:[%s2667_s4 + $0x2c] ss:$0 sps:$4 sm:$0x11]   ;;  %v1081_v26 = vrot.slane %v2382_v23, 1 }
  0x48   : > { %v1082_v27 = vrot.slane %v2383_v24, 1  ;;  %v1385_v30 = vshll.u32 %v2386_v17, 16  ;;  %v2384_v31 = vld [vmem:[%s2667_s4 + $0x60] sm:$0xff]   ;;  %v2387_v32 = vld [vmem:[%s2667_s4 + $0x68] ss:$0 sps:$4 sm:$0x11]  }
  0x49   : > { %v643_v59 = vsel %vm622_vm0, %v641_v53, %v642_v55  ;;  %v2388_v33 = vld [vmem:[%s2667_s4 + $0x30] sm:$0xff]   ;;  %v1390_v37 = vshll.u32 %v2387_v32, 16  ;;  %v2389_v38 = vld [vmem:[%s2667_s4 + $0x38] ss:$0 sps:$4 sm:$0x11]   ;;  %v2392_v52 = vld [vmem:[%s2667_s4 + $0x24] sm:$0xff]  }
  0x4a   : > { %964 = vrot.lane.b32.xlu1 %v929_v3, %s2548_s9  ;;  %v631_v3 = vsel %vm622_vm0, %v629_v60, %v630_v61  ;;  %v2390_v35 = vld [vmem:[%s2667_s4 + $0x54] sm:$0xff]   ;;  %v1083_v36 = vsel %vm622_vm0, %v1081_v26, %v1082_v27  ;;  %v1335_v39 = vshrl.u32 %v2388_v33, 16  ;;  %v1337_v40 = vshll.u32 %v2388_v33, 16  ;;  %v2391_v46 = vld [vmem:[%s2667_s4 + $0x5c] ss:$0 sps:$4 sm:$0x11]  }
  0x4b   : > { %956 = vrot.lane.b32.xlu0 %v881_v10, %s2548_s9  ;;  %v936_v10 = vor.u32 %v935_v5, %v931_v62  ;;  %v2385_v41 = vld [vmem:[%s2667_s4 + $0x30] sm:$0xff]   ;;  %v1392_v43 = vrot.slane %v1390_v37, 1  ;;  %v1342_v45 = vshll.u32 %v2389_v38, 16  ;;  %v490_v47 = vshrl.u32 %v2390_v35, 16  ;;  %v2400_v62 = vld [vmem:[%s2667_s4 + $0x60] sm:$0xff]  }
  0x4c   : > { %v492_v48 = vshll.u32 %v2390_v35, 16  ;;  %v2393_v55 = vld [vmem:[%s2667_s4 + $0x2c] ss:$0 sps:$4 sm:$0x11]   ;;  %v442_v57 = vshrl.u32 %v2392_v52, 16  ;;  %v945_v15 = vshll.u32 %v2400_v62, 16 }
  0x4d   : > { %v941_v18 = vsel %vm404_vm1, %v936_v10, %v940_v12  ;;  %v1344_v50 = vrot.slane %v1342_v45, 1  ;;  %v449_v60 = vshll.u32 %v2393_v55, 16  ;;  %v2394_v61 = vld [vmem:[%s2667_s4 + $0x54] sm:$0xfe]   ;;  %v2410_v32 = vld [vmem:[%s2667_s4 + $0x6c] sm:$0xff]   ;;  %v2417_v55 = vld [vmem:[%s2667_s4] sm:$0xff]  }
  0x4e   : > { %1109 = vrot.lane.b32.xlu1 %v1092_v11, %s2545_s6  ;;  %v2375_v11 = vld [vmem:[%s2667_s4 + $0x24] sm:$0xff]   ;;  %v494_v54 = vrot.slane %v492_v48, 1  ;;  %v2395_v2 = vld [vmem:[%s2667_s4 + $0x5c] ss:$0 sps:$4 sm:$0x11]   ;;  %v644_v5 = vrot.slane %v2394_v61, 1 }
  0x4f   : > { %1101 = vrot.lane.b32.xlu0 %v1080_v19, %s2545_s6  ;;  %v888_v19 = vor.u32 %v887_v13, %v883_v8  ;;  %v2396_v8 = vld [vmem:[%s2667_s4 + $0x24] sm:$0xfe]   ;;  %v2397_v9 = vld [vmem:[%s2667_s4 + $0x2c] ss:$0 sps:$4 sm:$0x11]   ;;  %v2402_v17 = vld [vmem:[%s2667_s4 + $0x30] sm:$0xff]  }
  0x50   : > { %v633_v12 = vrot.slane %v2397_v9, 1  ;;  %v895_v23 = vshrl.u32 %v2402_v17, 16  ;;  %v897_v24 = vshll.u32 %v2402_v17, 16  ;;  %v2399_v26 = vld [vmem:[%s2667_s4 + $0x30] sm:$0xff]   ;;  %308 = vst.msk [vmem:[#allocation2] sm:$0xff] %vm307_vm2, %v2417_v55 }
  0x51   : > { %v2406_v38 = vld [vmem:[%s2667_s4 + $0x30] sm:$0xfe]   ;;  %v2428_v9 = vld [vmem:[%s2667_s4 + $0x20] ss:$0 sps:$4 sm:$0x11]  }
  0x52   : > { %1199 = vrot.lane.b32.xlu1 %v2360_v14, %s2549_s10  ;;  %v890_v14 = vshll.u32 %v2379_v7, 16  ;;  %v645_v7 = vrot.slane %v2395_v2, 1  ;;  %v2419_v61 = vld [vmem:[%s2667_s4 + $0x30] sm:$0xff]  }
  0x53   : > { %1191 = vrot.lane.b32.xlu0 %v2361_v22, %s2549_s10  ;;  %v1094_v22 = vrot.slane %v2381_v16, 1  ;;  %v2401_v16 = vld [vmem:[%s2667_s4 + $0x68] ss:$0 sps:$4 sm:$0x11]   ;;  %312 = vst.msk [vmem:[#allocation2 + $0x40] sm:$0xff] %vm307_vm2, %v2419_v61 }
  0x54   : > { %v892_v20 = vrot.slane %v890_v14, 1  ;;  %v646_v13 = vsel %vm622_vm0, %v644_v5, %v645_v7  ;;  %v943_v14 = vshrl.u32 %v2400_v62, 16  ;;  %v2409_v62 = vld [vmem:[%s2667_s4 + $0x3c] sm:$0xff]   ;;  %v2425_v5 = vld [vmem:[%s2667_s4 + $0xc] sm:$0xff]  }
  0x55   : > { %v1095_v28 = vsel %vm622_vm0, %v1093_v21, %v1094_v22  ;;  %v950_v21 = vshll.u32 %v2401_v16, 16  ;;  %v2403_v22 = vld [vmem:[%s2667_s4 + $0x38] ss:$0 sps:$4 sm:$0x11]   ;;  %309 = vst.msk [vmem:[#allocation2 + $0x10] sm:$0xff] %vm307_vm2, %v2425_v5 }
  0x56   : > { %1416 = vrot.lane.b32.xlu1 %v1381_v34, %s2550_s11  ;;  %v893_v25 = vsel %vm404_vm1, %v888_v19, %v892_v20  ;;  %v1387_v34 = vrot.slane %v1385_v30, 1  ;;  %v947_v19 = vrot.slane %v945_v15, 1  ;;  %v2404_v30 = vld [vmem:[%s2667_s4 + $0x60] sm:$0xfe]   ;;  %v2427_v7 = vld [vmem:[%s2667_s4 + $0x18] sm:$0xfe]  }
  0x57   : > { %1408 = vrot.lane.b32.xlu0 %v1333_v44, %s2550_s11  ;;  %v1339_v44 = vrot.slane %v1337_v40, 1  ;;  %v952_v27 = vrot.slane %v950_v21, 1  ;;  %v1096_v35 = vrot.slane %v2404_v30, 1  ;;  %v1084_v40 = vrot.slane %v2406_v38, 1  ;;  %v2435_v30 = vld [vmem:[%s2667_s4 + $0x54] sm:$0xfe]  }
  0x58   : > { %v1388_v42 = vor.u32 %v1387_v34, %v1383_v29  ;;  %v902_v29 = vshll.u32 %v2403_v22, 16  ;;  %v1528_v15 = vrot.slane %v2428_v9, 1  ;;  %v2430_v16 = vld [vmem:[%s2667_s4 + $0x50] ss:$0 sps:$4 sm:$0x11]  }
  0x59   : > { %v1340_v49 = vor.u32 %v1339_v44, %v1335_v39  ;;  %v2407_v39 = vld [vmem:[%s2667_s4 + $0x38] ss:$0 sps:$4 sm:$0x11]   ;;  %v1397_v44 = vshll.u32 %v2410_v32, 16  ;;  %v1540_v22 = vrot.slane %v2430_v16, 1 }
  0x5a   : > { %513 = vrot.lane.b32.xlu1 %v488_v51, %s2547_s8  ;;  %v497_v51 = vshll.u32 %v2391_v46, 16  ;;  %v1393_v53 = vsel %vm404_vm1, %v1388_v42, %v1392_v43  ;;  %v904_v34 = vrot.slane %v902_v29, 1  ;;  %v1395_v43 = vshrl.u32 %v2410_v32, 16  ;;  %v2411_v46 = vld [vmem:[%s2667_s4 + $0x74] ss:$0 sps:$4 sm:$0x11]  }
  0x5b   : > { %505 = vrot.lane.b32.xlu0 %v440_v58, %s2547_s8  ;;  %v444_v58 = vshll.u32 %v2392_v52, 16  ;;  %v1345_v63 = vsel %vm404_vm1, %v1340_v49, %v1344_v50  ;;  %v1399_v48 = vrot.slane %v1397_v44, 1  ;;  %v2408_v49 = vld [vmem:[%s2667_s4 + $0x6c] sm:$0xff]   ;;  %v1402_v50 = vshll.u32 %v2411_v46, 16  ;;  %v2441_v46 = vld [vmem:[%s2667_s4 + $0x60] sm:$0xfe]  }
  0x5c   : > { %v499_v56 = vrot.slane %v497_v51, 1  ;;  %v2413_v51 = vld [vmem:[%s2667_s4 + $0x44] ss:$0 sps:$4 sm:$0x11]   ;;  %v2439_v38 = vld [vmem:[%s2667_s4 + $0x30] sm:$0xfe]  }
  0x5d   : > { %v446_v0 = vrot.slane %v444_v58, 1 }
  0x5e   : > { %659 = vrot.lane.b32.xlu1 %v643_v59, %s2546_s7  ;;  %v495_v59 = vor.u32 %v494_v54, %v490_v47  ;;  %v2412_v47 = vld [vmem:[%s2667_s4 + $0x3c] sm:$0xff]  }
  0x5f   : > { %651 = vrot.lane.b32.xlu0 %v631_v3, %s2546_s7  ;;  %v447_v6 = vor.u32 %v446_v0, %v442_v57  ;;  %v1349_v52 = vshll.u32 %v2412_v47, 16  ;;  %v1347_v54 = vshrl.u32 %v2412_v47, 16  ;;  %v1404_v57 = vrot.slane %v1402_v50, 1  ;;  %v2443_v50 = vld [vmem:[%s2667_s4 + $0x3c] sm:$0xfe]  }
  0x60   : > { %v500_v3 = vsel %vm404_vm1, %v495_v59, %v499_v56  ;;  %v1400_v56 = vor.u32 %v1399_v48, %v1395_v43  ;;  %v1354_v59 = vshll.u32 %v2413_v51, 16  ;;  %v1533_v43 = vrot.slane %v2439_v38, 1  ;;  %v2442_v48 = vld [vmem:[%s2667_s4 + $0x68] ss:$0 sps:$4 sm:$0x11]  }
  0x61   : > { %v1351_v58 = vrot.slane %v1349_v52, 1  ;;  %v1546_v52 = vrot.slane %v2442_v48, 1 }
  0x62   : > { %749 = vrot.lane.b32.xlu1 %v2374_v4, %s2544_s5  ;;  %v451_v4 = vrot.slane %v449_v60, 1  ;;  %v2418_v60 = vld [vmem:[%s3119_s1 + $0x18] sm:$0xff]   ;;  %v1356_v2 = vrot.slane %v1354_v59, 1 }
  0x63   : > { %741 = vrot.lane.b32.xlu0 %v2375_v11, %s2544_s5  ;;  %v632_v11 = vrot.slane %v2396_v8, 1  ;;  %1694 = vmatpush1.bf16.msra.mxu0 %v2418_v60  ;;  %v1352_v0 = vor.u32 %v1351_v58, %v1347_v54  ;;  %v1536_v54 = vrot.slane %v2443_v50, 1  ;;  %v2446_v58 = vld [vmem:[%s2667_s4 + $0x74] ss:$0 sps:$4 sm:$0x11]  }
  0x64   : > { %v452_v10 = vsel %vm404_vm1, %v447_v6, %v451_v4  ;;  %2229 = vmatpush1.bf16.msra.mxu1 %v2418_v60  ;;  %v1405_v4 = vsel %vm404_vm1, %v1400_v56, %v1404_v57  ;;  %1695 = vmatprep.subr.bf16.mxu0 %v2543_v1  ;;  %v2421_v6 = vld [vmem:[%s3119_s1 + $0x28] sm:$0xff]  }
  0x65   : > { %v634_v20 = vsel %vm622_vm0, %v632_v11, %v633_v12  ;;  %2221 = vmatprep.subr.bf16.mxu1 %v2543_v1  ;;  %v1357_v8 = vsel %vm404_vm1, %v1352_v0, %v1356_v2  ;;  %v2422_v11 = vld [vmem:[%s3119_s1 + $0x30] sm:$0xff]   ;;  %v1527_v12 = vrot.slane %v2427_v7, 1 }
  0x66   : > { %966 = vrot.lane.b32.xlu1 %v941_v18, %s2548_s9  ;;  %v2398_v18 = vld [vmem:[%s2667_s4 + $0x60] sm:$0xff]   ;;  %v2445_v57 = vld [vmem:[%s2667_s4 + $0x6c] sm:$0xfe]  }
  0x67   : > { %958 = vrot.lane.b32.xlu0 %v893_v25, %s2548_s9  ;;  %v948_v25 = vor.u32 %v947_v19, %v943_v14  ;;  %v2432_v14 = vld [vmem:[%s2667_s4 + $0x18] sm:$0xff]   ;;  %v1529_v21 = vsel %vm622_vm0, %v1527_v12, %v1528_v15  ;;  %v1548_v61 = vrot.slane %v2445_v57, 1 }
  0x68   : > { %310 = vst.msk [vmem:[#allocation2 + $0x20] sm:$0xff] %vm307_vm2, %v2432_v14  ;;  %1559 = vst.msk [vmem:[#allocation2 + $0x8] sm:$0xff] %vm307_vm2, %v1529_v21 }
  0x6a   : > { %1111 = vrot.lane.b32.xlu1 %v1095_v28, %s2545_s6  ;;  %v899_v28 = vrot.slane %v897_v24, 1  ;;  %v2433_v24 = vld [vmem:[%s2667_s4 + $0x24] sm:$0xfe]  }
  0x6b   : > { %1103 = vrot.lane.b32.xlu0 %v1083_v36, %s2545_s6  ;;  %v953_v36 = vsel %vm404_vm1, %v948_v25, %v952_v27  ;;  %v2423_v27 = vld [vmem:[%s3119_s1 + $0x38] sm:$0xff]  }
  0x6c   : > { %v900_v33 = vor.u32 %v899_v28, %v895_v23  ;;  %v2438_v23 = vld [vmem:[%s2667_s4 + $0x24] sm:$0xff]   ;;  %v1530_v28 = vrot.slane %v2433_v24, 1 }
  0x6d   : > { %311 = vst.msk [vmem:[#allocation2 + $0x30] sm:$0xff] %vm307_vm2, %v2438_v23 }
  0x6e   : > { %1201 = vrot.lane.b32.xlu1 %v2384_v31, %s2549_s10  ;;  %v2405_v31 = vld [vmem:[%s2667_s4 + $0x68] ss:$0 sps:$4 sm:$0x11]   ;;  %v905_v42 = vsel %vm404_vm1, %v900_v33, %v904_v34  ;;  %v2426_v34 = vld [vmem:[%s3119_s1 + $0x40] sm:$0xff]  }
  0x6f   : > { %1193 = vrot.lane.b32.xlu0 %v2385_v41, %s2549_s10  ;;  %v1097_v37 = vrot.slane %v2405_v31, 1  ;;  %v1085_v41 = vrot.slane %v2407_v39, 1  ;;  %v2436_v31 = vld [vmem:[%s2667_s4 + $0x5c] ss:$0 sps:$4 sm:$0x11]   ;;  %v1568_v39 = vld [vmem:[#allocation2 + $0x8] sm:$0xff] }
  0x70   : > { %2201 = vmatprep.mubr.msk.bf16.mxu0 %vm307_vm2, %v1568_v39 }
  0x71   : > { %v1098_v45 = vsel %vm622_vm0, %v1096_v35, %v1097_v37  ;;  %v1543_v37 = vrot.slane %v2436_v31, 1 }
  0x72   : > { %1418 = vrot.lane.b32.xlu1 %v1393_v53, %s2550_s11  ;;  %v1086_v53 = vsel %vm622_vm0, %v1084_v40, %v1085_v41  ;;  %v2440_v41 = vld [vmem:[%s2667_s4 + $0x38] ss:$0 sps:$4 sm:$0x11]  }
  0x73   : > { %1410 = vrot.lane.b32.xlu0 %v1345_v63, %s2550_s11  ;;  %v2420_v63 = vld [vmem:[%s3119_s1 + $0x20] sm:$0xff]  }
  0x74   : > { %1696 = vmatpush1.bf16.msra.mxu0 %v2420_v63  ;;  %2230 = vmatpush1.bf16.msra.mxu1 %v2420_v63 }
  0x75   : > { %1697 = vmatprep.subr.bf16.mxu0 %v2543_v1  ;;  %2222 = vmatprep.subr.bf16.mxu1 %v2543_v1 }
  0x76   : > { %515 = vrot.lane.b32.xlu1 %v500_v3, %s2547_s8  ;;  %v2424_v3 = vld [vmem:[%s2667_s4 + $0x3c] sm:$0xff]  }
  0x77   : > { %507 = vrot.lane.b32.xlu0 %v452_v10, %s2547_s8  ;;  %313 = vst.msk [vmem:[#allocation2 + $0x50] sm:$0xff] %vm307_vm2, %v2424_v3  ;;  %v2431_v10 = vld [vmem:[%s2667_s4 + $0x48] sm:$0xff]  }
  0x78   : > { %314 = vst.msk [vmem:[#allocation2 + $0x60] sm:$0xff] %vm307_vm2, %v2431_v10  ;;  %1698 = vmatpush1.bf16.msra.mxu0 %v2421_v6  ;;  %2231 = vmatpush1.bf16.msra.mxu1 %v2421_v6 }
  0x79   : > { %1699 = vmatprep.subr.bf16.mxu0 %v2543_v1  ;;  %2223 = vmatprep.subr.bf16.mxu1 %v2543_v1 }
  0x7a   : > { %661 = vrot.lane.b32.xlu1 %v646_v13, %s2546_s7  ;;  %v2429_v13 = vld [vmem:[%s2667_s4 + $0x48] sm:$0xfe]  }
  0x7b   : > { %653 = vrot.lane.b32.xlu0 %v634_v20, %s2546_s7  ;;  %v1539_v19 = vrot.slane %v2429_v13, 1  ;;  %v2437_v20 = vld [vmem:[%s2667_s4 + $0x54] sm:$0xff]  }
  0x7c   : > { %315 = vst.msk [vmem:[#allocation2 + $0x70] sm:$0xff] %vm307_vm2, %v2437_v20  ;;  %1700 = vmatpush1.bf16.msra.mxu0 %v2422_v11  ;;  %2232 = vmatpush1.bf16.msra.mxu1 %v2422_v11 }
  0x7d   : > { %v1541_v25 = vsel %vm622_vm0, %v1539_v19, %v1540_v22  ;;  %1701 = vmatprep.subr.bf16.mxu0 %v2543_v1  ;;  %2224 = vmatprep.subr.bf16.mxu1 %v2543_v1 }
  0x7e   : > { %751 = vrot.lane.b32.xlu1 %v2398_v18, %s2544_s5  ;;  %1563 = vst.msk [vmem:[#allocation2 + $0x48] sm:$0xff] %vm307_vm2, %v1541_v25 }
  0x7f   : > { %743 = vrot.lane.b32.xlu0 %v2399_v26, %s2544_s5  ;;  %v2434_v26 = vld [vmem:[%s2667_s4 + $0x2c] ss:$0 sps:$4 sm:$0x11]   ;;  %s2213_s5 = sshll.u32 %s1815_s29, 7 }
  0x80   : > { %v1531_v29 = vrot.slane %v2434_v26, 1  ;;  %1702 = vmatpush1.bf16.msra.mxu0 %v2423_v27  ;;  %2233 = vmatpush1.bf16.msra.mxu1 %v2423_v27  ;;  %s3057_s7 = scalar_lea.hbm %s3121_s3, %s2213_s5 }
  0x81   : > { %1703 = vmatprep.subr.bf16.mxu0 %v2543_v1  ;;  %2225 = vmatprep.subr.bf16.mxu1 %v2543_v1 }
  0x82   : > { %968 = vrot.lane.b32.xlu1 %v953_v36, %s2548_s9  ;;  %v1532_v35 = vsel %vm622_vm0, %v1530_v28, %v1531_v29  ;;  %v1542_v36 = vrot.slane %v2435_v30, 1 }
  0x83   : > { %960 = vrot.lane.b32.xlu0 %v905_v42, %s2548_s9  ;;  %1560 = vst.msk [vmem:[#allocation2 + $0x18] sm:$0xff] %vm307_vm2, %v1532_v35 }
  0x84   : > { %v1544_v40 = vsel %vm622_vm0, %v1542_v36, %v1543_v37  ;;  %1704 = vmatpush1.bf16.msra.mxu0 %v2426_v34  ;;  %2234 = vmatpush1.bf16.msra.mxu1 %v2426_v34 }
  0x85   : > { %1564 = vst.msk [vmem:[#allocation2 + $0x58] sm:$0xff] %vm307_vm2, %v1544_v40  ;;  %v1576_v44 = vld [vmem:[#allocation2 + $0x48] sm:$0xff] }
  0x86   : > { %1113 = vrot.lane.b32.xlu1 %v1098_v45, %s2545_s6  ;;  %v1534_v45 = vrot.slane %v2440_v41, 1  ;;  %2205 = vmatprep.mubr.msk.bf16.mxu1 %vm307_vm2, %v1576_v44 }
  0x87   : > { %1105 = vrot.lane.b32.xlu0 %v1086_v53, %s2545_s6  ;;  %v2444_v53 = vld [vmem:[%s2667_s4 + $0x44] ss:$0 sps:$4 sm:$0x11]   ;;  %s218_s4 = sand.u32 1, %s2517_s13  }
  0x88   : > { %v1535_v1 = vsel %vm622_vm0, %v1533_v43, %v1534_v45  ;;  %v1537_v56 = vrot.slane %v2444_v53, 1  ;;  %s3066_s8 = scalar_lea.sflag [#allocation4], %s218_s4 }
  0x89   : > { %1561 = vst.msk [vmem:[#allocation2 + $0x28] sm:$0xff] %vm307_vm2, %v1535_v1 }
  0x8a   : > { %1203 = vrot.lane.b32.xlu1 %v2408_v49, %s2549_s10  ;;  %v1545_v49 = vrot.slane %v2441_v46, 1  ;;  %v1538_v60 = vsel %vm622_vm0, %v1536_v54, %v1537_v56  ;;  %v1570_v12 = vld [vmem:[#allocation2 + $0x18] sm:$0xff] }
  0x8b   : > { %1195 = vrot.lane.b32.xlu0 %v2409_v62, %s2549_s10  ;;  %v1549_v62 = vrot.slane %v2446_v58, 1  ;;  %1562 = vst.msk [vmem:[#allocation2 + $0x38] sm:$0xff] %vm307_vm2, %v1538_v60  ;;  %s2551_s10 = smov [#allocation3]  }
  0x8c   : > { %v1547_v55 = vsel %vm622_vm0, %v1545_v49, %v1546_v52  ;;  %v1578_v9 = vld [vmem:[#allocation2 + $0x58] sm:$0xff] }
  0x8d   : > { %1565 = vst.msk [vmem:[#allocation2 + $0x68] sm:$0xff] %vm307_vm2, %v1547_v55  ;;  %v1550_v0 = vsel %vm622_vm0, %v1548_v61, %v1549_v62  ;;  %v3018_v62 = vld [vmem:[%s3120_s2] ss:$0 sm:$0xff] }
  0x8e   : > { %1420 = vrot.lane.b32.xlu1 %v1405_v4, %s2550_s11  ;;  %1566 = vst.msk [vmem:[#allocation2 + $0x78] sm:$0xff] %vm307_vm2, %v1550_v0 }
  0x8f   : > { %1412 = vrot.lane.b32.xlu0 %v1357_v8, %s2550_s11  ;;  %s1941_s11 = sshll.u32 %s218_s4, 7 }
  0x90   : > { %v1572_v30 = vld [vmem:[#allocation2 + $0x28] sm:$0xff]  ;;  %s3022_s24 = scalar_lea.vmem [#allocation3], %s1941_s11  ;;  %s2451_s11 = sshll.u32 %s2551_s10, 4  ;;  %s2452_s11 = int_to_ptr.vmem [resolvable:$false] %s2451_s11 }
  0x91   : > { %s1818_s6 = sshll.u32 %s3022_s24, 4  ;;  %s2453_s20 = scalar_lea.vmem %s2452_s11, 4096  ;;  %s3059_s6 = int_to_ptr.vmem [resolvable:$true] %s1818_s6 }
  0x92   : > { %v1574_v48 = vld [vmem:[#allocation2 + $0x38] sm:$0xff]  ;;  %s2447_s9 = scalar_lea.vmem %s3059_s6, 2048  ;;  %p2454_p4 = scmp.lt.s32.totalorder %s3059_s6, %s2452_s11 }
  0x93   : > { %v2894_v17 = vpop.permute.xlu1 %745  ;;  %v2896_v18 = vpop.permute.xlu0 %737  ;;  %p2448_p0 = scmp.ne.s32.totalorder %s3059_s6, %s2447_s9  ;;  %p2455_p5 = scmp.lt.s32.totalorder %s2453_s20, %s2447_s9 }
  0x94   : > { %v1580_v27 = vld [vmem:[#allocation2 + $0x68] sm:$0xff] }
  0x95   : > { %v1582_v45 = vld [vmem:[#allocation2 + $0x78] sm:$0xff]  ;;  %p2449_p1 = pnand %p2448_p0, %p2625_p3  ;;  %p2456_p6 = por %p2455_p5, %p2454_p4 }
  0x97   : > { %v2917_v32 = vpop.permute.xlu0 %1099  ;;  %p2450_p2 = pneg %p2449_p1 }
  0x98   : > { %v648_v33 = vpop.permute.xlu1 %647 }
  0x99   : > { %p2457_p7 = pnand %p2456_p6, %p2450_p2 }
  0x9c   : > { %v656_v42 = vpop.permute.xlu1 %655 }
  0x9d   : > { %v502_v47 = vpop.permute.xlu0 %501 }
  0x9e   : > { %526 = vst.msk [vmem:[#allocation2] sm:$0xff] %vm525_vm3, %v502_v47 }
  0x9f   : > { %672 = vst.msk [vmem:[#allocation2] sm:$0xff] %vm671_vm4, %v648_v33 }
  0xa0   : > { %v1108_v51 = vpop.permute.xlu1 %1107  ;;  %762 = vst.msk [vmem:[#allocation2] sm:$0xff] %vm761_vm5, %v2896_v18 }
  0xa1   : > { %v510_v59 = vpop.permute.xlu0 %509 }
  0xa2   : > { %530 = vst.msk [vmem:[#allocation2 + $0x40] sm:$0xff] %vm525_vm3, %v510_v59 }
  0xa3   : > { %676 = vst.msk [vmem:[#allocation2 + $0x40] sm:$0xff] %vm671_vm4, %v656_v42 }
  0xa4   : > { %v963_v63 = vpop.permute.xlu1 %962  ;;  %766 = vst.msk [vmem:[#allocation2 + $0x40] sm:$0xff] %vm761_vm5, %v2894_v17 }
  0xa5   : > { %983 = vst.msk [vmem:[#allocation2 + $0x40] sm:$0xff] %vm978_vm6, %v963_v63  ;;  %v955_v2 = vpop.permute.xlu0 %954 }
  0xa6   : > { %979 = vst.msk [vmem:[#allocation2] sm:$0xff] %vm978_vm6, %v955_v2 }
  0xa7   : > { %1128 = vst.msk [vmem:[#allocation2 + $0x40] sm:$0xff] %vm1123_vm7, %v1108_v51  ;;  %1124 = vst.msk [vmem:[#allocation2] sm:$0xff] %vm1123_vm7, %v2917_v32 }
  0xa8   : > { %v1198_v3 = vpop.permute.xlu1 %1197 }
  0xa9   : > { %1218 = vst.msk [vmem:[#allocation2 + $0x40] sm:$0xff] %vm1213_vm8, %v1198_v3  ;;  %v1190_v4 = vpop.permute.xlu0 %1189 }
  0xaa   : > { %1214 = vst.msk [vmem:[#allocation2] sm:$0xff] %vm1213_vm8, %v1190_v4 }
  0xac   : > { %v1415_v5 = vpop.permute.xlu1 %1414 }
  0xad   : > { %1435 = vst.msk [vmem:[#allocation2 + $0x40] sm:$0xff] %vm1430_vm9, %v1415_v5  ;;  %v1407_v6 = vpop.permute.xlu0 %1406 }
  0xae   : > { %1431 = vst.msk [vmem:[#allocation2] sm:$0xff] %vm1430_vm9, %v1407_v6 }
  0xb0   : > { %v512_v7 = vpop.permute.xlu1 %511 }
  0xb1   : > { %531 = vst.msk [vmem:[#allocation2 + $0x50] sm:$0xff] %vm525_vm3, %v512_v7  ;;  %v504_v8 = vpop.permute.xlu0 %503 }
  0xb2   : > { %527 = vst.msk [vmem:[#allocation2 + $0x10] sm:$0xff] %vm525_vm3, %v504_v8 }
  0xb4   : > { %v658_v10 = vpop.permute.xlu1 %657  ;;  %v1575_v11 = vld [vmem:[#allocation2 + $0x40] sm:$0xff] }
  0xb5   : > { %677 = vst.msk [vmem:[#allocation2 + $0x50] sm:$0xff] %vm671_vm4, %v658_v10  ;;  %1752 = vmatmul.mubr.bf16.vlgmr.msra.gmra.mrb[0].mxu1 %v1575_v11  ;;  %v1567_v13 = vld [vmem:[#allocation2] sm:$0xff]  ;;  %v650_v14 = vpop.permute.xlu0 %649 }
  0xb6   : > { %2206 = vmatprep.mubr.msk.bf16.mxu1 %vm307_vm2, %v1578_v9  ;;  %1720 = vmatmul.mubr.bf16.vlgmr.msra.gmra.mrb[0].mxu0 %v1567_v13  ;;  %673 = vst.msk [vmem:[#allocation2 + $0x10] sm:$0xff] %vm671_vm4, %v650_v14 }
  0xb7   : > { %2202 = vmatprep.mubr.msk.bf16.mxu0 %vm307_vm2, %v1570_v12 }
  0xb8   : > { %v748_v15 = vpop.permute.xlu1 %747 }
  0xb9   : > { %767 = vst.msk [vmem:[#allocation2 + $0x50] sm:$0xff] %vm761_vm5, %v748_v15  ;;  %v740_v16 = vpop.permute.xlu0 %739 }
  0xba   : > { %763 = vst.msk [vmem:[#allocation2 + $0x10] sm:$0xff] %vm761_vm5, %v740_v16 }
  0xbc   : > { %v965_v17 = vpop.permute.xlu1 %964 }
  0xbd   : > { %984 = vst.msk [vmem:[#allocation2 + $0x50] sm:$0xff] %vm978_vm6, %v965_v17  ;;  %v957_v18 = vpop.permute.xlu0 %956 }
  0xbe   : > { %980 = vst.msk [vmem:[#allocation2 + $0x10] sm:$0xff] %vm978_vm6, %v957_v18 }
  0xc0   : > { %v1110_v19 = vpop.permute.xlu1 %1109 }
  0xc1   : > { %1129 = vst.msk [vmem:[#allocation2 + $0x50] sm:$0xff] %vm1123_vm7, %v1110_v19  ;;  %v1102_v20 = vpop.permute.xlu0 %1101 }
  0xc2   : > { %1125 = vst.msk [vmem:[#allocation2 + $0x10] sm:$0xff] %vm1123_vm7, %v1102_v20 }
  0xc4   : > { %v1200_v21 = vpop.permute.xlu1 %1199 }
  0xc5   : > { %1219 = vst.msk [vmem:[#allocation2 + $0x50] sm:$0xff] %vm1213_vm8, %v1200_v21  ;;  %v1192_v22 = vpop.permute.xlu0 %1191 }
  0xc6   : > { %1215 = vst.msk [vmem:[#allocation2 + $0x10] sm:$0xff] %vm1213_vm8, %v1192_v22 }
  0xc8   : > { %v1417_v23 = vpop.permute.xlu1 %1416 }
  0xc9   : > { %1436 = vst.msk [vmem:[#allocation2 + $0x50] sm:$0xff] %vm1430_vm9, %v1417_v23  ;;  %v1409_v24 = vpop.permute.xlu0 %1408 }
  0xca   : > { %1432 = vst.msk [vmem:[#allocation2 + $0x10] sm:$0xff] %vm1430_vm9, %v1409_v24 }
  0xcc   : > { %v514_v25 = vpop.permute.xlu1 %513 }
  0xcd   : > { %532 = vst.msk [vmem:[#allocation2 + $0x60] sm:$0xff] %vm525_vm3, %v514_v25  ;;  %v506_v26 = vpop.permute.xlu0 %505 }
  0xce   : > { %528 = vst.msk [vmem:[#allocation2 + $0x20] sm:$0xff] %vm525_vm3, %v506_v26 }
  0xd0   : > { %v660_v28 = vpop.permute.xlu1 %659  ;;  %v1577_v29 = vld [vmem:[#allocation2 + $0x50] sm:$0xff] }
  0xd1   : > { %678 = vst.msk [vmem:[#allocation2 + $0x60] sm:$0xff] %vm671_vm4, %v660_v28  ;;  %1760 = vmatmul.mubr.bf16.gmra.mrb[4].mxu1 %v1577_v29  ;;  %v652_v31 = vpop.permute.xlu0 %651  ;;  %v1569_v32 = vld [vmem:[#allocation2 + $0x10] sm:$0xff] }
  0xd2   : > { %2207 = vmatprep.mubr.msk.bf16.mxu1 %vm307_vm2, %v1580_v27  ;;  %674 = vst.msk [vmem:[#allocation2 + $0x20] sm:$0xff] %vm671_vm4, %v652_v31  ;;  %1728 = vmatmul.mubr.bf16.gmra.mrb[4].mxu0 %v1569_v32 }
  0xd3   : > { %2203 = vmatprep.mubr.msk.bf16.mxu0 %vm307_vm2, %v1572_v30 }
  0xd4   : > { %v750_v33 = vpop.permute.xlu1 %749 }
  0xd5   : > { %768 = vst.msk [vmem:[#allocation2 + $0x60] sm:$0xff] %vm761_vm5, %v750_v33  ;;  %v742_v34 = vpop.permute.xlu0 %741 }
  0xd6   : > { %764 = vst.msk [vmem:[#allocation2 + $0x20] sm:$0xff] %vm761_vm5, %v742_v34 }
  0xd8   : > { %v967_v35 = vpop.permute.xlu1 %966 }
  0xd9   : > { %985 = vst.msk [vmem:[#allocation2 + $0x60] sm:$0xff] %vm978_vm6, %v967_v35  ;;  %v959_v36 = vpop.permute.xlu0 %958 }
  0xda   : > { %981 = vst.msk [vmem:[#allocation2 + $0x20] sm:$0xff] %vm978_vm6, %v959_v36 }
  0xdc   : > { %v1112_v37 = vpop.permute.xlu1 %1111 }
  0xdd   : > { %1130 = vst.msk [vmem:[#allocation2 + $0x60] sm:$0xff] %vm1123_vm7, %v1112_v37  ;;  %v1104_v38 = vpop.permute.xlu0 %1103 }
  0xde   : > { %1126 = vst.msk [vmem:[#allocation2 + $0x20] sm:$0xff] %vm1123_vm7, %v1104_v38 }
  0xe0   : > { %v1202_v39 = vpop.permute.xlu1 %1201 }
  0xe1   : > { %1220 = vst.msk [vmem:[#allocation2 + $0x60] sm:$0xff] %vm1213_vm8, %v1202_v39  ;;  %v1194_v40 = vpop.permute.xlu0 %1193 }
  0xe2   : > { %1216 = vst.msk [vmem:[#allocation2 + $0x20] sm:$0xff] %vm1213_vm8, %v1194_v40 }
  0xe4   : > { %v1419_v41 = vpop.permute.xlu1 %1418 }
  0xe5   : > { %1437 = vst.msk [vmem:[#allocation2 + $0x60] sm:$0xff] %vm1430_vm9, %v1419_v41  ;;  %v1411_v42 = vpop.permute.xlu0 %1410 }
  0xe6   : > { %1433 = vst.msk [vmem:[#allocation2 + $0x20] sm:$0xff] %vm1430_vm9, %v1411_v42 }
  0xe8   : > { %v516_v43 = vpop.permute.xlu1 %515 }
  0xe9   : > { %533 = vst.msk [vmem:[#allocation2 + $0x70] sm:$0xff] %vm525_vm3, %v516_v43  ;;  %v508_v44 = vpop.permute.xlu0 %507 }
  0xea   : > { %529 = vst.msk [vmem:[#allocation2 + $0x30] sm:$0xff] %vm525_vm3, %v508_v44 }
  0xec   : > { %v662_v46 = vpop.permute.xlu1 %661  ;;  %v1579_v47 = vld [vmem:[#allocation2 + $0x60] sm:$0xff] }
  0xed   : > { %679 = vst.msk [vmem:[#allocation2 + $0x70] sm:$0xff] %vm671_vm4, %v662_v46  ;;  %1768 = vmatmul.mubr.bf16.gmra.mrb[8].mxu1 %v1579_v47  ;;  %v654_v1 = vpop.permute.xlu0 %653  ;;  %v1571_v49 = vld [vmem:[#allocation2 + $0x20] sm:$0xff] }
  0xee   : > { %2208 = vmatprep.mubr.msk.bf16.mxu1 %vm307_vm2, %v1582_v45  ;;  %675 = vst.msk [vmem:[#allocation2 + $0x30] sm:$0xff] %vm671_vm4, %v654_v1  ;;  %1736 = vmatmul.mubr.bf16.gmra.mrb[8].mxu0 %v1571_v49 }
  0xef   : > { %2204 = vmatprep.mubr.msk.bf16.mxu0 %vm307_vm2, %v1574_v48 }
  0xf0   : > { %v752_v50 = vpop.permute.xlu1 %751 }
  0xf1   : > { %769 = vst.msk [vmem:[#allocation2 + $0x70] sm:$0xff] %vm761_vm5, %v752_v50  ;;  %v744_v51 = vpop.permute.xlu0 %743 }
  0xf2   : > { %765 = vst.msk [vmem:[#allocation2 + $0x30] sm:$0xff] %vm761_vm5, %v744_v51 }
  0xf4   : > { %v969_v52 = vpop.permute.xlu1 %968 }
  0xf5   : > { %986 = vst.msk [vmem:[#allocation2 + $0x70] sm:$0xff] %vm978_vm6, %v969_v52  ;;  %v961_v53 = vpop.permute.xlu0 %960 }
  0xf6   : > { %982 = vst.msk [vmem:[#allocation2 + $0x30] sm:$0xff] %vm978_vm6, %v961_v53 }
  0xf8   : > { %v1114_v54 = vpop.permute.xlu1 %1113 }
  0xf9   : > { %1131 = vst.msk [vmem:[#allocation2 + $0x70] sm:$0xff] %vm1123_vm7, %v1114_v54  ;;  %v1106_v55 = vpop.permute.xlu0 %1105 }
  0xfa   : > { %1127 = vst.msk [vmem:[#allocation2 + $0x30] sm:$0xff] %vm1123_vm7, %v1106_v55 }
  0xfc   : > { %v1204_v56 = vpop.permute.xlu1 %1203 }
  0xfd   : > { %1221 = vst.msk [vmem:[#allocation2 + $0x70] sm:$0xff] %vm1213_vm8, %v1204_v56  ;;  %v1196_v57 = vpop.permute.xlu0 %1195 }
  0xfe   : > { %1217 = vst.msk [vmem:[#allocation2 + $0x30] sm:$0xff] %vm1213_vm8, %v1196_v57 }
 0x100   : > { %v1421_v58 = vpop.permute.xlu1 %1420 }
 0x101   : > { %1438 = vst.msk [vmem:[#allocation2 + $0x70] sm:$0xff] %vm1430_vm9, %v1421_v58  ;;  %v1413_v59 = vpop.permute.xlu0 %1412 }
 0x102   : > { %1434 = vst.msk [vmem:[#allocation2 + $0x30] sm:$0xff] %vm1430_vm9, %v1413_v59 }
 0x108   : > { %v1581_v60 = vld [vmem:[#allocation2 + $0x70] sm:$0xff] }
 0x109   : > { %1776 = vmatmul.mubr.bf16.gmra.mrb[12].mxu1 %v1581_v60  ;;  %v1573_v61 = vld [vmem:[#allocation2 + $0x30] sm:$0xff] }
 0x10a   : > { %1744 = vmatmul.mubr.bf16.gmra.mrb[12].mxu0 %v1573_v61 }
 0x188   : > { %v1753_v63 = vpop.f32.mrb[0].mxu1 }
 0x189   : > { %v1754_v0 = vadd.f32 %v3018_v62, %v1753_v63  ;;  %v1755_v2 = vpop.f32.mrb[1].mxu1  ;;  %v1721_v3 = vpop.f32.mrb[0].mxu0 }
 0x18a   : > { %v1756_v4 = vpop.f32.mrb[2].mxu1  ;;  %v1722_v5 = vadd.f32 %v3018_v62, %v1721_v3  ;;  %v1723_v6 = vpop.f32.mrb[1].mxu0 }
 0x18b   : > { %1792 = vst [vmem:[%s3022_s24 + $0x40] sm:$0xff] %v1754_v0  ;;  %v1757_v7 = vadd.f32 %v3018_v62, %v1756_v4  ;;  %v1758_v8 = vpop.f32.mrb[3].mxu1  ;;  %v1724_v9 = vpop.f32.mrb[2].mxu0 }
 0x18c   : > { %1784 = vst [vmem:[%s3022_s24] sm:$0xff] %v1722_v5  ;;  %v1725_v10 = vadd.f32 %v3018_v62, %v1724_v9  ;;  %v1726_v11 = vpop.f32.mrb[3].mxu0 }
 0x18d   : > { %1793 = vst [vmem:[%s3022_s24 + $0x48] sm:$0xff] %v1757_v7 }
 0x18e   : > { %1785 = vst [vmem:[%s3022_s24 + $0x8] sm:$0xff] %v1725_v10 }
 0x1a4   : > { %v1761_v12 = vpop.f32.mrb[4].mxu1 }
 0x1a5   : > { %v1762_v13 = vadd.f32 %v3018_v62, %v1761_v12  ;;  %v1763_v14 = vpop.f32.mrb[5].mxu1  ;;  %v1729_v16 = vpop.f32.mrb[4].mxu0 }
 0x1a6   : > { %v1764_v15 = vpop.f32.mrb[6].mxu1  ;;  %v1730_v19 = vadd.f32 %v3018_v62, %v1729_v16  ;;  %v1731_v20 = vpop.f32.mrb[5].mxu0 }
 0x1a7   : > { %1794 = vst [vmem:[%s3022_s24 + $0x50] sm:$0xff] %v1762_v13  ;;  %v1765_v17 = vadd.f32 %v3018_v62, %v1764_v15  ;;  %v1766_v18 = vpop.f32.mrb[7].mxu1  ;;  %v1732_v21 = vpop.f32.mrb[6].mxu0 }
 0x1a8   : > { %1786 = vst [vmem:[%s3022_s24 + $0x10] sm:$0xff] %v1730_v19  ;;  %v1733_v22 = vadd.f32 %v3018_v62, %v1732_v21  ;;  %v1734_v23 = vpop.f32.mrb[7].mxu0 }
 0x1a9   : > { %1795 = vst [vmem:[%s3022_s24 + $0x58] sm:$0xff] %v1765_v17 }
 0x1aa   : > { %1787 = vst [vmem:[%s3022_s24 + $0x18] sm:$0xff] %v1733_v22 }
 0x1c0   : > { %v1769_v24 = vpop.f32.mrb[8].mxu1 }
 0x1c1   : > { %v1770_v25 = vadd.f32 %v3018_v62, %v1769_v24  ;;  %v1771_v26 = vpop.f32.mrb[9].mxu1  ;;  %v1737_v28 = vpop.f32.mrb[8].mxu0 }
 0x1c2   : > { %v1772_v27 = vpop.f32.mrb[10].mxu1  ;;  %v1738_v31 = vadd.f32 %v3018_v62, %v1737_v28  ;;  %v1739_v32 = vpop.f32.mrb[9].mxu0 }
 0x1c3   : > { %1796 = vst [vmem:[%s3022_s24 + $0x60] sm:$0xff] %v1770_v25  ;;  %v1773_v29 = vadd.f32 %v3018_v62, %v1772_v27  ;;  %v1774_v30 = vpop.f32.mrb[11].mxu1  ;;  %v1740_v33 = vpop.f32.mrb[10].mxu0 }
 0x1c4   : > { %1788 = vst [vmem:[%s3022_s24 + $0x20] sm:$0xff] %v1738_v31  ;;  %v1741_v34 = vadd.f32 %v3018_v62, %v1740_v33  ;;  %v1742_v35 = vpop.f32.mrb[11].mxu0 }
 0x1c5   : > { %1797 = vst [vmem:[%s3022_s24 + $0x68] sm:$0xff] %v1773_v29 }
 0x1c6   : > { %1789 = vst [vmem:[%s3022_s24 + $0x28] sm:$0xff] %v1741_v34 }
 0x1dc   : > { %v1777_v36 = vpop.f32.mrb[12].mxu1 }
 0x1dd   : > { %v1778_v37 = vadd.f32 %v3018_v62, %v1777_v36  ;;  %v1779_v38 = vpop.f32.mrb[13].mxu1  ;;  %v1745_v40 = vpop.f32.mrb[12].mxu0 }
 0x1de   : > { %v1780_v39 = vpop.f32.mrb[14].mxu1  ;;  %v1746_v43 = vadd.f32 %v3018_v62, %v1745_v40  ;;  %v1747_v44 = vpop.f32.mrb[13].mxu0 }
 0x1df   : > { %1798 = vst [vmem:[%s3022_s24 + $0x70] sm:$0xff] %v1778_v37  ;;  %v1781_v41 = vadd.f32 %v3018_v62, %v1780_v39  ;;  %v1782_v42 = vpop.f32.mrb[15].mxu1  ;;  %v1748_v45 = vpop.f32.mrb[14].mxu0 }
 0x1e0   : > { %1790 = vst [vmem:[%s3022_s24 + $0x30] sm:$0xff] %v1746_v43  ;;  %v1749_v46 = vadd.f32 %v3018_v62, %v1748_v45  ;;  %v1750_v47 = vpop.f32.mrb[15].mxu0 }
 0x1e1   : > { %1799 = vst [vmem:[%s3022_s24 + $0x78] sm:$0xff] %v1781_v41 }
 0x1e2   : > { %1791 = vst [vmem:[%s3022_s24 + $0x38] sm:$0xff] %v1749_v46 }
 0x1e3   : > { %2460 = shalt.err (!%p2457_p7)
}
 0x1e4   : > { %s2461_s4 = scalar_lea.hbm %s3057_s7, 2048  ;;  %s2465_s27 = scalar_lea.hbm %s3121_s3, 8192 }
 0x1e5   : > { %p2462_p9 = scmp.ne.s32.totalorder %s3057_s7, %s2461_s4  ;;  %p2466_p12 = scmp.lt.u32.totalorder %s3057_s7, %s3121_s3 }
 0x1e6   : > { %p2467_p13 = scmp.lt.u32.totalorder %s2465_s27, %s2461_s4  ;;  %p2469_p1 = scmp.lt.u32.totalorder %s2461_s4, %s3057_s7 }
 0x1e7   : > { %p2463_p10 = pnand %p2462_p9, %p2625_p3 }
 0x1e8   : > { %p2468_p0 = por %p2467_p13, %p2466_p12 }
 0x1e9   : > { %p2464_p11 = pneg %p2463_p10 }
 0x1ea   : > { %p2470_p2 = por %p2469_p1, %p2468_p0 }
 0x1ec   : > { %p2471_p4 = pnand %p2470_p2, %p2464_p11 }
 0x1ee   : > { %2474 = shalt.err (!%p2471_p4)
}
 0x1ef   : > { %s2552_s5 = smov 128   ;;  %s2553_s15 = smov 8  }
 0x1f0   : > { %2237 = dma.vmem_to_hbm [thread:$0]  (%p2625_p3), %s3059_s6, 2048, %s3057_s7, %s3066_s8, %s2552_s5, %s2552_s5, %s2553_s15  }
 0x1f1 PF: > { %p2243_p5 = scmp.ge.s32.totalorder %s2541_s19, 2  ;;  %s1833_s16 = sand.u32 1, %s2513_s12  }
 0x1f2   : > { %s1834_s9 = scalar_lea.sflag [#allocation4], %s1833_s16 }
 0x1f3   : > { %p2240_p6 = pnand %p2243_p5, %p2634_p8 }
 0x1f5   : > { %2508 = dma.done.wait (!%p2240_p6), %s1834_s9, 2048  }
 0x1f6   : > { %2510 = vsyncadd (!%p2240_p6), %s1834_s9, 4294965248  ;;  %s16_s19 = sadd.s32 1, %s2541_s19   ;;  %s3124_s12 = smov %s2517_s13 }
 0x1f7   : > { %p13_p7 = scmp.ge.s32.totalorder %s16_s19, 6   ;;  %s3125_s13 = smov %s2521_s14 }
 0x1f8   : > { %s3126_s14 = smov %s2643_s30  ;;  %s3127_s15 = smov %s2533_s17 }
 0x1f9   : > { %s3128_s16 = smov %s2537_s18  ;;  %s3129_s17 = smov %s3132_s22 }
 0x1fa   : > { %s3130_s18 = smov %s3136_s23  ;;  %15 = sbr.rel (!%p13_p7) target bundleno = 5 (0x5), region = 79 }
 0x201   :  { %1839 = vsyncpa [#allocation4], 1 }
 0x202   :  { %1841 = vsyncpa [#allocation4 + $0x1], 1 }

</bundles_post_ra>
